<compile_context>
chip_gen: v5e
topology: v5e:2x2
jax: 0.10.0
libtpu: 0.0.40
codegen_flags: <defaults>
</compile_context>

<pallas_src>
import jax
import jax.numpy as jnp
from jax.experimental import pallas as pl
from jax.experimental.pallas import tpu as pltpu


def _erf_approx(x):
    # Abramowitz & Stegun 7.1.26 (max abs err ~1.5e-7): matches the exact
    # (erf-based) nn.GELU() without relying on a lax.erf Mosaic lowering.
    p = 0.3275911
    a1, a2, a3, a4, a5 = 0.254829592, -0.284496736, 1.421413741, -1.453152027, 1.061405429
    ax = jnp.abs(x)
    t = 1.0 / (1.0 + p * ax)
    poly = ((((a5 * t + a4) * t + a3) * t + a2) * t + a1) * t
    y = 1.0 - poly * jnp.exp(-ax * ax)
    return jnp.where(x >= 0.0, y, -y)


def _gelu_exact(x):
    return 0.5 * x * (1.0 + _erf_approx(x * 0.7071067811865476))


def _inter_conv_kernel(x_ref, wc_ref, bc_ref, w1_ref, w2_ref, o_ref):
    # x_ref : (BB, HW, Cin)  bf16  strided spatial sub-grid, channels-last
    # wc_ref: (Cin, OUP)     bf16  1x1-conv weight (transposed)
    # bc_ref: (1, OUP)       f32   conv bias
    # w1_ref: (OUP, HID)     bf16  SE first linear (transposed, no bias)
    # w2_ref: (HID, OUP)     bf16  SE second linear (transposed, no bias)
    # o_ref : (BB, HW, OUP)  f32   SE-scaled conv activations
    bb, hw, cin = x_ref.shape
    oup = o_ref.shape[-1]

    x = x_ref[...]                                                    # (BB, HW, Cin)

    # --- SE branch from the *pooled input*.  The pool commutes with the 1x1
    #     conv (mean_hw(x @ Wc + bc) == (mean_hw x) @ Wc + bc), which breaks the
    #     h -> pool -> SE serial chain so these tiny matmuls overlap the big one.
    xbar = jnp.sum(x.astype(jnp.float32), axis=1) * (1.0 / hw)        # (BB, Cin)
    y = jnp.dot(xbar.astype(jnp.bfloat16), wc_ref[...],
                preferred_element_type=jnp.float32) + bc_ref[...]     # (BB, OUP)
    z = _gelu_exact(jnp.dot(y.astype(jnp.bfloat16), w1_ref[...],
                            preferred_element_type=jnp.float32))      # (BB, HID)
    s_pre = jnp.dot(z.astype(jnp.bfloat16), w2_ref[...],
                    preferred_element_type=jnp.float32)               # (BB, OUP)
    s = pl.reciprocal(1.0 + jnp.exp(-s_pre), approx=True)             # sigmoid (EUP)

    # --- stride-2 1x1 conv as one batched matmul: (BB*HW, Cin) @ (Cin, OUP).
    h = jnp.dot(x.reshape(bb * hw, cin), wc_ref[...],
                preferred_element_type=jnp.float32)
    h = h.reshape(bb, hw, oup) + bc_ref[...]                          # bias broadcast

    # --- channel-wise SE rescale; keep lane-dense (HW, 768) output orientation.
    o_ref[...] = (h * s[:, None, :]).astype(o_ref.dtype)


def intermediate_conv(x_nchw, wc, bc, w1, w2, *, batch_block=None):
    """Pallas implementation of InterMediateConv.forward.  x_nchw: (B, Cin, H, W)."""
    B, Cin, H, W = x_nchw.shape
    OUP = wc.shape[0]
    HID = w1.shape[0]
    assert OUP == 768, "forward hard-codes the 256/512/768 split and c1=16"

    # 1x1 conv with stride 2 == channel matmul on the stride-2 spatial sub-grid.
    # Strided slice + NCHW->NHWC transpose + flatten + bf16 cast: one fused copy.
    x_sub = x_nchw[:, :, ::2, ::2]                                    # (B, Cin, Hs, Ws)
    Hs, Ws = x_sub.shape[2], x_sub.shape[3]
    HW = Hs * Ws
    x_flat = jnp.transpose(x_sub, (0, 2, 3, 1)).reshape(B, HW, Cin).astype(jnp.bfloat16)

    # Weights in bf16 (halves DMA bytes, native MXU dtype); bias stays f32.
    wc_t = wc.reshape(OUP, Cin).T.astype(jnp.bfloat16)                # (Cin, OUP)
    bc_r = bc.reshape(1, OUP).astype(jnp.float32)                     # (1, OUP)
    w1_t = w1.T.astype(jnp.bfloat16)                                  # (OUP, HID)
    w2_t = w2.T.astype(jnp.bfloat16)                                  # (HID, OUP)

    if batch_block is None:
        # All batches in one grid step (amortizes ~0.35us/step pipeline overhead).
        # For v7x with large B, pass batch_block=B//2 to shard across both TCs;
        # batch_block also bounds the VMEM block if HW is ever scaled up.
        batch_block = B
    assert B % batch_block == 0
    n_blk = B // batch_block

    out = pl.pallas_call(
        _inter_conv_kernel,
        out_shape=jax.ShapeDtypeStruct((B, HW, OUP), jnp.float32),
        grid_spec=pltpu.PrefetchScalarGridSpec(
            num_scalar_prefetch=0,
            grid=(n_blk,),
            in_specs=[
                pl.BlockSpec((batch_block, HW, Cin), lambda b: (b, 0, 0)),
                pl.BlockSpec((Cin, OUP), lambda b: (0, 0)),
                pl.BlockSpec((1, OUP), lambda b: (0, 0)),
                pl.BlockSpec((OUP, HID), lambda b: (0, 0)),
                pl.BlockSpec((HID, OUP), lambda b: (0, 0)),
            ],
            out_specs=pl.BlockSpec((batch_block, HW, OUP), lambda b: (b, 0, 0)),
        ),
        compiler_params=pltpu.CompilerParams(dimension_semantics=("parallel",)),
    )(x_flat, wc_t, bc_r, w1_t, w2_t)

    # einops 'b (g c1 c2) h w -> b g (c1 h) (c2 w)' (g=3, c1=c2=16) expressed
    # directly from the NHWC kernel output in a single transpose.
    out6 = out.reshape(B, Hs, Ws, 3, 16, 16)
    return jnp.transpose(out6, (0, 3, 4, 1, 5, 2)).reshape(B, 3, 16 * Hs, 16 * Ws)


# ---------------------------------------------------------------------------
# Pure-JAX f32 reference mirroring the PyTorch forward (independent layout path).
def _rearrange_c1c2(t, c1=16):
    # einops: 'b (c1 c2) h w -> b 1 (c1 h) (c2 w)'
    b, c, h, w = t.shape
    c2 = c // c1
    return t.reshape(b, c1, c2, h, w).transpose(0, 1, 3, 2, 4).reshape(b, 1, c1 * h, c2 * w)


def reference(x_nchw, wc, bc, w1, w2):
    B, Cin, H, W = x_nchw.shape
    OUP = wc.shape[0]
    x_sub = x_nchw[:, :, ::2, ::2]
    h = jnp.einsum('bchw,oc->bohw', x_sub, wc.reshape(OUP, Cin),
                   precision=jax.lax.Precision.HIGHEST) + bc[None, :, None, None]
    y = jnp.mean(h, axis=(2, 3))                                      # (B, OUP)
    z = _gelu_exact(jnp.dot(y, w1.T, precision=jax.lax.Precision.HIGHEST))
    s = 1.0 / (1.0 + jnp.exp(-jnp.dot(z, w2.T, precision=jax.lax.Precision.HIGHEST)))
    xs = h * s[:, :, None, None]
    x1 = _rearrange_c1c2(xs[:, :256])
    x2 = _rearrange_c1c2(xs[:, 256:512])
    x3 = _rearrange_c1c2(xs[:, 512:768])
    return jnp.concatenate([x1, x2, x3], axis=1)


if __name__ == "__main__":
    # Small shapes: inp=16, spatial 8x8, batch 2.  oup must stay 768 because the
    # forward hard-codes the 256/512/768 channel split and c1=16 rearrange.
    B, CIN, H, W = 2, 16, 8, 8
    OUP, HID = 768, 192

    key = jax.random.PRNGKey(0)
    k = jax.random.split(key, 5)
    x  = jax.random.normal(k[0], (B, CIN, H, W), jnp.float32)
    wc = jax.random.normal(k[1], (OUP, CIN, 1, 1), jnp.float32) * 0.05   # Conv2d weight
    bc = jax.random.normal(k[2], (OUP,), jnp.float32) * 0.05             # Conv2d bias
    w1 = jax.random.normal(k[3], (HID, OUP), jnp.float32) * 0.05         # se[0] Linear weight
    w2 = jax.random.normal(k[4], (OUP, HID), jnp.float32) * 0.05         # se[2] Linear weight

    out = jax.block_until_ready(intermediate_conv(x, wc, bc, w1, w2))
    ref = reference(x, wc, bc, w1, w2)

    assert out.shape == (B, 3, 16 * (H // 2), 16 * (W // 2)), out.shape
    assert bool(jnp.allclose(out, ref, atol=1e-2, rtol=1e-2)), "mismatch vs reference"
    print("KERNEL_OK")
</pallas_src>

<mosaic_0001>
module attributes {stable_mosaic.version = 11 : i64} {
  func.func @_inter_conv_kernel(%arg0: i32, %arg1: memref<2x16x16xbf16, #tpu.memory_space<vmem>>, %arg2: memref<16x768xbf16, #tpu.memory_space<vmem>>, %arg3: memref<1x768xf32, #tpu.memory_space<vmem>>, %arg4: memref<768x192xbf16, #tpu.memory_space<vmem>>, %arg5: memref<192x768xbf16, #tpu.memory_space<vmem>>, %arg6: memref<2x16x768xf32, #tpu.memory_space<vmem>>) attributes {dimension_semantics = [#tpu.dimension_semantics<parallel>], iteration_bounds = array<i64: 1>, scalar_prefetch = 0 : i64, scratch_operands = 0 : i64, tpu.core_type = #tpu.core_type<tc>, window_params = [{transform_indices = @transform_0, window_bounds = array<i64: 2, 16, 16>}, {pipeline_mode = #tpu.pipeline_mode<synchronous>, transform_indices = @transform_1, window_bounds = array<i64: 16, 768>}, {pipeline_mode = #tpu.pipeline_mode<synchronous>, transform_indices = @transform_2, window_bounds = array<i64: 1, 768>}, {pipeline_mode = #tpu.pipeline_mode<synchronous>, transform_indices = @transform_3, window_bounds = array<i64: 768, 192>}, {pipeline_mode = #tpu.pipeline_mode<synchronous>, transform_indices = @transform_4, window_bounds = array<i64: 192, 768>}, {transform_indices = @transform_5, window_bounds = array<i64: 2, 16, 768>}]} {
    %c0 = arith.constant 0 : index
    %c0_0 = arith.constant 0 : index
    %c0_1 = arith.constant 0 : index
    %0 = vector.load %arg1[%c0, %c0_0, %c0_1] : memref<2x16x16xbf16, #tpu.memory_space<vmem>>, vector<2x16x16xbf16>
    %1 = arith.extf %0 : vector<2x16x16xbf16> to vector<2x16x16xf32>
    %cst = arith.constant dense<0.000000e+00> : vector<2x16xf32>
    %2 = vector.multi_reduction <add>, %1, %cst [1] : vector<2x16x16xf32> to vector<2x16xf32>
    %cst_2 = arith.constant 6.250000e-02 : f32
    %3 = vector.broadcast %cst_2 : f32 to vector<2x16xf32>
    %4 = arith.mulf %2, %3 : vector<2x16xf32>
    %5 = arith.truncf %4 : vector<2x16xf32> to vector<2x16xbf16>
    %c0_3 = arith.constant 0 : index
    %c0_4 = arith.constant 0 : index
    %6 = vector.load %arg2[%c0_3, %c0_4] : memref<16x768xbf16, #tpu.memory_space<vmem>>, vector<16x768xbf16>
    %cst_5 = arith.constant dense<0.000000e+00> : vector<2x768xf32>
    %7 = tpu.matmul %5, %6, %cst_5 {dimension_numbers = #tpu.dot_dimension_numbers<[1], [0], [0], [1], [0, 0, 1, 1], [], []>} : vector<2x16xbf16>, vector<16x768xbf16>, vector<2x768xf32> -> vector<2x768xf32>
    %c0_6 = arith.constant 0 : index
    %c0_7 = arith.constant 0 : index
    %8 = vector.load %arg3[%c0_6, %c0_7] : memref<1x768xf32, #tpu.memory_space<vmem>>, vector<1x768xf32>
    %9 = vector.broadcast %8 : vector<1x768xf32> to vector<2x768xf32>
    %10 = arith.addf %7, %9 : vector<2x768xf32>
    %11 = arith.truncf %10 : vector<2x768xf32> to vector<2x768xbf16>
    %c0_8 = arith.constant 0 : index
    %c0_9 = arith.constant 0 : index
    %12 = vector.load %arg4[%c0_8, %c0_9] : memref<768x192xbf16, #tpu.memory_space<vmem>>, vector<768x192xbf16>
    %cst_10 = arith.constant dense<0.000000e+00> : vector<2x192xf32>
    %13 = tpu.matmul %11, %12, %cst_10 {dimension_numbers = #tpu.dot_dimension_numbers<[1], [0], [0], [1], [0, 0, 1, 1], [], []>} : vector<2x768xbf16>, vector<768x192xbf16>, vector<2x192xf32> -> vector<2x192xf32>
    %cst_11 = arith.constant 5.000000e-01 : f32
    %14 = vector.broadcast %cst_11 : f32 to vector<2x192xf32>
    %15 = arith.mulf %14, %13 : vector<2x192xf32>
    %cst_12 = arith.constant 0.707106769 : f32
    %16 = vector.broadcast %cst_12 : f32 to vector<2x192xf32>
    %17 = arith.mulf %13, %16 : vector<2x192xf32>
    %18 = math.absf %17 : vector<2x192xf32>
    %cst_13 = arith.constant 0.327591091 : f32
    %19 = vector.broadcast %cst_13 : f32 to vector<2x192xf32>
    %20 = arith.mulf %19, %18 : vector<2x192xf32>
    %cst_14 = arith.constant 1.000000e+00 : f32
    %21 = vector.broadcast %cst_14 : f32 to vector<2x192xf32>
    %22 = arith.addf %21, %20 : vector<2x192xf32>
    %cst_15 = arith.constant 1.000000e+00 : f32
    %23 = vector.broadcast %cst_15 : f32 to vector<2x192xf32>
    %24 = arith.divf %23, %22 : vector<2x192xf32>
    %cst_16 = arith.constant 1.06140542 : f32
    %25 = vector.broadcast %cst_16 : f32 to vector<2x192xf32>
    %26 = arith.mulf %25, %24 : vector<2x192xf32>
    %cst_17 = arith.constant -1.45315206 : f32
    %27 = vector.broadcast %cst_17 : f32 to vector<2x192xf32>
    %28 = arith.addf %26, %27 : vector<2x192xf32>
    %29 = arith.mulf %28, %24 : vector<2x192xf32>
    %cst_18 = arith.constant 1.42141378 : f32
    %30 = vector.broadcast %cst_18 : f32 to vector<2x192xf32>
    %31 = arith.addf %29, %30 : vector<2x192xf32>
    %32 = arith.mulf %31, %24 : vector<2x192xf32>
    %cst_19 = arith.constant -0.284496725 : f32
    %33 = vector.broadcast %cst_19 : f32 to vector<2x192xf32>
    %34 = arith.addf %32, %33 : vector<2x192xf32>
    %35 = arith.mulf %34, %24 : vector<2x192xf32>
    %cst_20 = arith.constant 0.254829586 : f32
    %36 = vector.broadcast %cst_20 : f32 to vector<2x192xf32>
    %37 = arith.addf %35, %36 : vector<2x192xf32>
    %38 = arith.mulf %37, %24 : vector<2x192xf32>
    %cst_21 = arith.constant 0.000000e+00 : f32
    %39 = vector.broadcast %cst_21 : f32 to vector<2x192xf32>
    %40 = arith.subf %39, %18 : vector<2x192xf32>
    %41 = arith.mulf %40, %18 : vector<2x192xf32>
    %42 = math.exp %41 : vector<2x192xf32>
    %43 = arith.mulf %38, %42 : vector<2x192xf32>
    %cst_22 = arith.constant 1.000000e+00 : f32
    %44 = vector.broadcast %cst_22 : f32 to vector<2x192xf32>
    %45 = arith.subf %44, %43 : vector<2x192xf32>
    %cst_23 = arith.constant 0.000000e+00 : f32
    %46 = vector.broadcast %cst_23 : f32 to vector<2x192xf32>
    %47 = arith.cmpf oge, %17, %46 : vector<2x192xf32>
    %cst_24 = arith.constant 0.000000e+00 : f32
    %48 = vector.broadcast %cst_24 : f32 to vector<2x192xf32>
    %49 = arith.subf %48, %45 : vector<2x192xf32>
    %50 = arith.select %47, %45, %49 : vector<2x192xi1>, vector<2x192xf32>
    %cst_25 = arith.constant 1.000000e+00 : f32
    %51 = vector.broadcast %cst_25 : f32 to vector<2x192xf32>
    %52 = arith.addf %51, %50 : vector<2x192xf32>
    %53 = arith.mulf %15, %52 : vector<2x192xf32>
    %54 = arith.truncf %53 : vector<2x192xf32> to vector<2x192xbf16>
    %c0_26 = arith.constant 0 : index
    %c0_27 = arith.constant 0 : index
    %55 = vector.load %arg5[%c0_26, %c0_27] : memref<192x768xbf16, #tpu.memory_space<vmem>>, vector<192x768xbf16>
    %cst_28 = arith.constant dense<0.000000e+00> : vector<2x768xf32>
    %56 = tpu.matmul %54, %55, %cst_28 {dimension_numbers = #tpu.dot_dimension_numbers<[1], [0], [0], [1], [0, 0, 1, 1], [], []>} : vector<2x192xbf16>, vector<192x768xbf16>, vector<2x768xf32> -> vector<2x768xf32>
    %cst_29 = arith.constant 0.000000e+00 : f32
    %57 = vector.broadcast %cst_29 : f32 to vector<2x768xf32>
    %58 = arith.subf %57, %56 : vector<2x768xf32>
    %59 = math.exp %58 : vector<2x768xf32>
    %cst_30 = arith.constant 1.000000e+00 : f32
    %60 = vector.broadcast %cst_30 : f32 to vector<2x768xf32>
    %61 = arith.addf %60, %59 : vector<2x768xf32>
    %62 = tpu.reciprocal %61 {approx = true} : vector<2x768xf32> -> vector<2x768xf32>
    %63 = vector.shape_cast %0 : vector<2x16x16xbf16> to vector<32x16xbf16>
    %c0_31 = arith.constant 0 : index
    %c0_32 = arith.constant 0 : index
    %64 = vector.load %arg2[%c0_31, %c0_32] : memref<16x768xbf16, #tpu.memory_space<vmem>>, vector<16x768xbf16>
    %cst_33 = arith.constant dense<0.000000e+00> : vector<32x768xf32>
    %65 = tpu.matmul %63, %64, %cst_33 {dimension_numbers = #tpu.dot_dimension_numbers<[1], [0], [0], [1], [0, 0, 1, 1], [], []>} : vector<32x16xbf16>, vector<16x768xbf16>, vector<32x768xf32> -> vector<32x768xf32>
    %66 = vector.shape_cast %65 : vector<32x768xf32> to vector<2x16x768xf32>
    %c0_34 = arith.constant 0 : index
    %c0_35 = arith.constant 0 : index
    %67 = vector.load %arg3[%c0_34, %c0_35] : memref<1x768xf32, #tpu.memory_space<vmem>>, vector<1x768xf32>
    %68 = vector.shape_cast %67 : vector<1x768xf32> to vector<1x1x768xf32>
    %69 = vector.broadcast %68 : vector<1x1x768xf32> to vector<2x16x768xf32>
    %70 = arith.addf %66, %69 : vector<2x16x768xf32>
    %71 = vector.shape_cast %62 : vector<2x768xf32> to vector<2x1x768xf32>
    %72 = vector.broadcast %71 : vector<2x1x768xf32> to vector<2x16x768xf32>
    %73 = arith.mulf %70, %72 : vector<2x16x768xf32>
    %c0_36 = arith.constant 0 : index
    %c0_37 = arith.constant 0 : index
    %c0_38 = arith.constant 0 : index
    %74 = vector.load %arg6[%c0_36, %c0_37, %c0_38] : memref<2x16x768xf32, #tpu.memory_space<vmem>>, vector<2x16x768xf32>
    tpu.vector_store %arg6[%c0_36, %c0_37, %c0_38], %73 {strides = array<i32>} : memref<2x16x768xf32, #tpu.memory_space<vmem>>, vector<2x16x768xf32>,
    return
  }
  func.func @transform_0(%arg0: i32) -> (i32, i32, i32) {
    %c0_i32 = arith.constant 0 : i32
    %c0_i32_0 = arith.constant 0 : i32
    %c0_i32_1 = arith.constant 0 : i32
    return %arg0, %c0_i32, %c0_i32_0 : i32, i32, i32
  }
  func.func @transform_1(%arg0: i32) -> (i32, i32) {
    %c0_i32 = arith.constant 0 : i32
    %c0_i32_0 = arith.constant 0 : i32
    %c0_i32_1 = arith.constant 0 : i32
    return %c0_i32, %c0_i32_0 : i32, i32
  }
  func.func @transform_2(%arg0: i32) -> (i32, i32) {
    %c0_i32 = arith.constant 0 : i32
    %c0_i32_0 = arith.constant 0 : i32
    %c0_i32_1 = arith.constant 0 : i32
    return %c0_i32, %c0_i32_0 : i32, i32
  }
  func.func @transform_3(%arg0: i32) -> (i32, i32) {
    %c0_i32 = arith.constant 0 : i32
    %c0_i32_0 = arith.constant 0 : i32
    %c0_i32_1 = arith.constant 0 : i32
    return %c0_i32, %c0_i32_0 : i32, i32
  }
  func.func @transform_4(%arg0: i32) -> (i32, i32) {
    %c0_i32 = arith.constant 0 : i32
    %c0_i32_0 = arith.constant 0 : i32
    %c0_i32_1 = arith.constant 0 : i32
    return %c0_i32, %c0_i32_0 : i32, i32
  }
  func.func @transform_5(%arg0: i32) -> (i32, i32, i32) {
    %c0_i32 = arith.constant 0 : i32
    %c0_i32_0 = arith.constant 0 : i32
    %c0_i32_1 = arith.constant 0 : i32
    return %arg0, %c0_i32, %c0_i32_0 : i32, i32, i32
  }
}

</mosaic_0001>

<bundles_post_ra>
// kernel: tpu_custom_call.1
= control target key start
LH: loop header
LB: loop body
LE: loop exit
PB: predicated region body
PF: predicated region fallthrough
CT: control target
= control target key end

     0   :  { %vm30_vm0 = vcmask 130048   ;;  %s4183_s0 = inlined_call_operand.vmem [shape: bf16[2,16,16], index: 0, kind: input, shape index: {}]   ;;  %s4184_s1 = inlined_call_operand.vmem [shape: bf16[16,768], index: 1, kind: input, shape index: {}]   ;;  %s4185_s2 = inlined_call_operand.vmem [shape: f32[1,768], index: 2, kind: input, shape index: {}]   ;;  %s4186_s3 = inlined_call_operand.vmem [shape: bf16[768,192], index: 3, kind: input, shape index: {}]   ;;  %s4187_s4 = inlined_call_operand.vmem [shape: bf16[192,768], index: 4, kind: input, shape index: {}]   ;;  %s4188_s5 = inlined_call_operand.hbm [shape: f32[2,16,768], index: 5, kind: output, shape index: {}]  }
   0x1   :  { %v1910_v0 = vld [vmem:[%s4184_s1] sm:$0xf]  ;;  %v2641_v1 = vld [vmem:[%s4184_s1 + $0x14] sm:$0xf0]  ;;  %v2638_v2 = vld [vmem:[%s4184_s1 + $0x4] sm:$0xf] }
   0x2   :  { %v2915_v3 = vor.u32 %v2641_v1, %v1910_v0  ;;  %v1912_v4 = vld [vmem:[%s4184_s1 + $0x18] sm:$0xf0]  ;;  %v2639_v5 = vld [vmem:[%s4184_s1 + $0xc] sm:$0xf]  ;;  %v1920_v6 = vld [vmem:[%s4184_s1 + $0x20] sm:$0xf0] }
   0x3   :  { %v2926_v7 = vor.u32 %v2638_v2, %v1912_v4  ;;  %v2928_v8 = vor.u32 %v2639_v5, %v1920_v6  ;;  %v22_v9 = vld [vmem:[%s4183_s0] sm:$0xff]   ;;  %v24_v10 = vld [vmem:[%s4183_s0 + $0x8] sm:$0xff]   ;;  %v1926_v17 = vld [vmem:[%s4184_s1 + $0x10] sm:$0xf] }
   0x4   :  { %v1918_v11 = vld [vmem:[%s4184_s1 + $0x8] sm:$0xf]  ;;  %120 = vmatpush.bf16.msra.mxu0 %v2915_v3  ;;  %v26_v12 = vunpack.c.l.bf16 %v22_v9  ;;  %v27_v13 = vunpack.c.h.bf16 %v22_v9  ;;  %v28_v14 = vunpack.c.l.bf16 %v24_v10  ;;  %v29_v15 = vunpack.c.h.bf16 %v24_v10  ;;  %v2642_v16 = vld [vmem:[%s4184_s1 + $0x1c] sm:$0xf0] }
   0x5   :  { %v2643_v18 = vld [vmem:[%s4184_s1 + $0x24] sm:$0xf0]  ;;  %133 = vmatpush.bf16.msra.mxu2 %v2926_v7  ;;  %159 = vmatpush.bf16.msra.mxu3 %v2928_v8  ;;  %v2951_v19 = vor.u32 %v2642_v16, %v1918_v11 }
   0x6   :  { %v2953_v20 = vor.u32 %v2643_v18, %v1926_v17 }
   0x7   :  { %10 = vsyncpa [#allocation3], 0  ;;  %v31_v21 = vsel %vm30_vm0, %v26_v12, 0.0  ;;  %v32_v22 = vsel %vm30_vm0, %v27_v13, 0.0  ;;  %v40_v23 = vsel %vm30_vm0, %v28_v14, 0.0  ;;  %v41_v24 = vsel %vm30_vm0, %v29_v15, 0.0 }
   0x8   :  { %v33_v25 = vadd.f32 %v32_v22, %v31_v21  ;;  %v42_v26 = vadd.f32 %v41_v24, %v40_v23  ;;  %172 = vmatpush.bf16.msrb.mxu0 %v2953_v20  ;;  %v2640_v33 = vld [vmem:[%s4184_s1 + $0x14] sm:$0xf]  ;;  %v1928_v34 = vld [vmem:[%s4184_s1 + $0x28] sm:$0xf0]  ;;  %v2060_v38 = vld [vmem:[%s4186_s3 + $0xf0] sm:$0xf] }
   0x9   :  { %146 = vmatpush.bf16.msrb.mxu2 %v2951_v19  ;;  %v2967_v37 = vor.u32 %v2640_v33, %v1928_v34  ;;  %v2675_v39 = vld [vmem:[%s4186_s3 + $0xf4] sm:$0xf0]  ;;  %v2188_v40 = vld [vmem:[%s4186_s3 + $0x1f0] sm:$0xf]  ;;  %v2052_v46 = vld [vmem:[%s4186_s3 + $0xe0] sm:$0xf] }
   0xa   :  { %v34_v27 = vrot.slane %v33_v25, 4  ;;  %v43_v28 = vrot.slane %v42_v26, 4  ;;  %v2061_v43 = vor.u32 %v2675_v39, %v2060_v38  ;;  %v2707_v44 = vld [vmem:[%s4186_s3 + $0x1f4] sm:$0xf0]  ;;  %v2673_v47 = vld [vmem:[%s4186_s3 + $0xe4] sm:$0xf0] }
   0xb   :  { %185 = vmatpush.bf16.msra.mxu1 %v2967_v37  ;;  %v2189_v45 = vor.u32 %v2707_v44, %v2188_v40  ;;  %v2053_v50 = vor.u32 %v2673_v47, %v2052_v46  ;;  %v2180_v51 = vld [vmem:[%s4186_s3 + $0x1e0] sm:$0xf]  ;;  %v2705_v52 = vld [vmem:[%s4186_s3 + $0x1e4] sm:$0xf0]  ;;  %v2044_v54 = vld [vmem:[%s4186_s3 + $0xd0] sm:$0xf] }
   0xc   :  { %v35_v29 = vadd.f32 %v34_v27, %v33_v25  ;;  %v44_v30 = vadd.f32 %v43_v28, %v42_v26  ;;  %786 = vmatpush.bf16.msrb.mxu3 %v2061_v43  ;;  %v2181_v53 = vor.u32 %v2705_v52, %v2180_v51  ;;  %v2671_v55 = vld [vmem:[%s4186_s3 + $0xd4] sm:$0xf0]  ;;  %v2172_v58 = vld [vmem:[%s4186_s3 + $0x1d0] sm:$0xf]  ;;  %vm77_vm1 = vcmask 1041409   ;;  %s1896_s24 = sshll.u32 %s4188_s5, 4  ;;  %s1897_s24 = int_to_ptr.hbm [resolvable:$true] %s1896_s24 }
   0xd   :  { %v2703_v59 = vld [vmem:[%s4186_s3 + $0x1d4] sm:$0xf0]  ;;  %v2045_v62 = vor.u32 %v2671_v55, %v2044_v54  ;;  %v1996_v63 = vld [vmem:[%s4186_s3 + $0x70] sm:$0xf]  ;;  %v2036_v5 = vld [vmem:[%s4186_s3 + $0xc0] sm:$0xf] }
   0xe   :  { %v36_v31 = vrot.slane %v35_v29, 2  ;;  %v45_v32 = vrot.slane %v44_v30, 2  ;;  %v2659_v0 = vld [vmem:[%s4186_s3 + $0x74] sm:$0xf0]  ;;  %v2173_v1 = vor.u32 %v2703_v59, %v2172_v58  ;;  %v2669_v6 = vld [vmem:[%s4186_s3 + $0xc4] sm:$0xf0] }
   0xf   :  { %812 = vmatpush.bf16.msrb.mxu1 %v2189_v45  ;;  %v2164_v9 = vld [vmem:[%s4186_s3 + $0x1c0] sm:$0xf]  ;;  %v2701_v10 = vld [vmem:[%s4186_s3 + $0x1c4] sm:$0xf0]  ;;  %v2124_v11 = vld [vmem:[%s4186_s3 + $0x170] sm:$0xf]  ;;  %v1997_v15 = vor.u32 %v2659_v0, %v1996_v63  ;;  %v2037_v18 = vor.u32 %v2669_v6, %v2036_v5 }
  0x10   :  { %v37_v35 = vadd.f32 %v36_v31, %v35_v29  ;;  %v46_v36 = vadd.f32 %v45_v32, %v44_v30  ;;  %787 = vmatpush.bf16.msrb.mxu3 %v2053_v50  ;;  %v2691_v12 = vld [vmem:[%s4186_s3 + $0x174] sm:$0xf0]  ;;  %v1988_v16 = vld [vmem:[%s4186_s3 + $0x60] sm:$0xf]  ;;  %v2657_v17 = vld [vmem:[%s4186_s3 + $0x64] sm:$0xf0]  ;;  %v2165_v21 = vor.u32 %v2701_v10, %v2164_v9 }
  0x11   :  { %v2028_v22 = vld [vmem:[%s4186_s3 + $0xb0] sm:$0xf]  ;;  %v2667_v23 = vld [vmem:[%s4186_s3 + $0xb4] sm:$0xf0]  ;;  %v2125_v24 = vor.u32 %v2691_v12, %v2124_v11  ;;  %v2116_v27 = vld [vmem:[%s4186_s3 + $0x160] sm:$0xf]  ;;  %v1989_v29 = vor.u32 %v2657_v17, %v1988_v16 }
  0x12   :  { %v38_v41 = vrot.slane %v37_v35, 1  ;;  %v47_v42 = vrot.slane %v46_v36, 1  ;;  %v2156_v25 = vld [vmem:[%s4186_s3 + $0x1b0] sm:$0xf]  ;;  %v2699_v26 = vld [vmem:[%s4186_s3 + $0x1b4] sm:$0xf0]  ;;  %v2029_v32 = vor.u32 %v2667_v23, %v2028_v22 }
  0x13   :  { %813 = vmatpush.bf16.msrb.mxu1 %v2181_v53  ;;  %v2689_v28 = vld [vmem:[%s4186_s3 + $0x164] sm:$0xf0]  ;;  %v1980_v30 = vld [vmem:[%s4186_s3 + $0x50] sm:$0xf]  ;;  %v2655_v31 = vld [vmem:[%s4186_s3 + $0x54] sm:$0xf0]  ;;  %v2157_v33 = vor.u32 %v2699_v26, %v2156_v25 }
  0x14   :  { %v39_v48 = vadd.f32 %v38_v41, %v37_v35  ;;  %v48_v49 = vadd.f32 %v47_v42, %v46_v36  ;;  %788 = vmatpush.bf16.msrb.mxu3 %v2045_v62  ;;  %v2020_v34 = vld [vmem:[%s4186_s3 + $0xa0] sm:$0xf]  ;;  %v2665_v35 = vld [vmem:[%s4186_s3 + $0xa4] sm:$0xf0]  ;;  %v2117_v36 = vor.u32 %v2689_v28, %v2116_v27  ;;  %v2108_v40 = vld [vmem:[%s4186_s3 + $0x150] sm:$0xf]  ;;  %v1981_v42 = vor.u32 %v2655_v31, %v1980_v30 }
  0x15   :  { %v2148_v38 = vld [vmem:[%s4186_s3 + $0x1a0] sm:$0xf]  ;;  %v2697_v39 = vld [vmem:[%s4186_s3 + $0x1a4] sm:$0xf0]  ;;  %v2687_v41 = vld [vmem:[%s4186_s3 + $0x154] sm:$0xf0]  ;;  %v2021_v45 = vor.u32 %v2665_v35, %v2020_v34 }
  0x16   :  { %v49_v56 = vmul.f32 0.0625, %v39_v48  ;;  %v50_v57 = vmul.f32 0.0625, %v48_v49  ;;  %v1972_v43 = vld [vmem:[%s4186_s3 + $0x40] sm:$0xf]  ;;  %v2653_v44 = vld [vmem:[%s4186_s3 + $0x44] sm:$0xf0]  ;;  %v2149_v46 = vor.u32 %v2697_v39, %v2148_v38  ;;  %v2109_v49 = vor.u32 %v2687_v41, %v2108_v40 }
  0x17   :  { %814 = vmatpush.bf16.msrb.mxu1 %v2173_v1  ;;  %v2012_v47 = vld [vmem:[%s4186_s3 + $0x90] sm:$0xf]  ;;  %v2663_v48 = vld [vmem:[%s4186_s3 + $0x94] sm:$0xf0]  ;;  %v2100_v52 = vld [vmem:[%s4186_s3 + $0x140] sm:$0xf]  ;;  %v1973_v54 = vor.u32 %v2653_v44, %v1972_v43 }
  0x18   :  { %v51_v60 = vpack.c.bf16 %v49_v56, %v49_v56  ;;  %v52_v61 = vpack.c.bf16 %v50_v57, %v50_v57  ;;  %789 = vmatpush.bf16.msrb.mxu3 %v2037_v18  ;;  %v2140_v50 = vld [vmem:[%s4186_s3 + $0x190] sm:$0xf]  ;;  %v2695_v51 = vld [vmem:[%s4186_s3 + $0x194] sm:$0xf0]  ;;  %v2685_v53 = vld [vmem:[%s4186_s3 + $0x144] sm:$0xf0]  ;;  %v2013_v57 = vor.u32 %v2663_v48, %v2012_v47 }
  0x19   :  { %v1964_v55 = vld [vmem:[%s4186_s3 + $0x30] sm:$0xf]  ;;  %v2651_v56 = vld [vmem:[%s4186_s3 + $0x34] sm:$0xf0]  ;;  %v2004_v58 = vld [vmem:[%s4186_s3 + $0x80] sm:$0xf]  ;;  %v2141_v59 = vor.u32 %v2695_v51, %v2140_v50 }
  0x1a   :  { %v75_v2 = vunpack.c.l.b16 %v51_v60  ;;  %v76_v4 = vunpack.c.l.b16 %v52_v61  ;;  %v2661_v60 = vld [vmem:[%s4186_s3 + $0x84] sm:$0xf0]  ;;  %v2101_v61 = vor.u32 %v2685_v53, %v2100_v52  ;;  %v2132_v62 = vld [vmem:[%s4186_s3 + $0x180] sm:$0xf]  ;;  %v2316_v0 = vld [vmem:[%s4186_s3 + $0x2f0] sm:$0xf]  ;;  %v1965_v9 = vor.u32 %v2651_v56, %v1964_v55 }
  0x1b   :  { %815 = vmatpush.bf16.msrb.mxu1 %v2165_v21  ;;  %v2693_v63 = vld [vmem:[%s4186_s3 + $0x184] sm:$0xf0]  ;;  %v2739_v1 = vld [vmem:[%s4186_s3 + $0x2f4] sm:$0xf0]  ;;  %v2092_v5 = vld [vmem:[%s4186_s3 + $0x130] sm:$0xf]  ;;  %v2005_v10 = vor.u32 %v2661_v60, %v2004_v58 }
  0x1c   :  { %v78_v13 = vsel %vm77_vm1, %v76_v4, %v75_v2  ;;  %790 = vmatpush.bf16.msrb.mxu3 %v2029_v32  ;;  %v2674_v2 = vld [vmem:[%s4186_s3 + $0xf4] sm:$0xf]  ;;  %v2062_v4 = vld [vmem:[%s4186_s3 + $0xf8] sm:$0xf0]  ;;  %v2683_v6 = vld [vmem:[%s4186_s3 + $0x134] sm:$0xf0] }
  0x1d   :  { %v3031_v14 = vpack.c.b16 %v78_v13, %v78_v13  ;;  %v1956_v11 = vld [vmem:[%s4186_s3 + $0x20] sm:$0xf]  ;;  %v2649_v12 = vld [vmem:[%s4186_s3 + $0x24] sm:$0xf0]  ;;  %v2133_v13 = vor.u32 %v2693_v63, %v2132_v62  ;;  %v2065_v16 = vor.u32 %v2674_v2, %v2062_v4  ;;  %v2093_v17 = vor.u32 %v2683_v6, %v2092_v5  ;;  %v2672_v22 = vld [vmem:[%s4186_s3 + $0xe4] sm:$0xf] }
  0x1e   :  { %v2308_v18 = vld [vmem:[%s4186_s3 + $0x2e0] sm:$0xf]  ;;  %v2737_v21 = vld [vmem:[%s4186_s3 + $0x2e4] sm:$0xf0]  ;;  %v2054_v23 = vld [vmem:[%s4186_s3 + $0xe8] sm:$0xf0]  ;;  %v1957_v25 = vor.u32 %v2649_v12, %v1956_v11 }
  0x1f   :  { %1932 = vmatmul.msk.bf16.vlgmr.msra.gmra.mxu0 %vm30_vm0, %v3031_v14  ;;  %1933 = vmatmul.msk.bf16.vlgmr.msra.gmra.mxu2 %vm30_vm0, %v3031_v14  ;;  %v1948_v26 = vld [vmem:[%s4186_s3 + $0x10] sm:$0xf]  ;;  %v2647_v27 = vld [vmem:[%s4186_s3 + $0x14] sm:$0xf0]  ;;  %v2309_v28 = vor.u32 %v2737_v21, %v2308_v18  ;;  %v2046_v34 = vld [vmem:[%s4186_s3 + $0xd8] sm:$0xf0] }
  0x20   :  { %1935 = vmatmul.msk.bf16.vlgmr.msra.gmra.mxu3 %vm30_vm0, %v3031_v14  ;;  %1937 = vmatmul.msk.bf16.vlgmr.msra.gmra.mxu1 %vm30_vm0, %v3031_v14  ;;  %v2300_v31 = vld [vmem:[%s4186_s3 + $0x2d0] sm:$0xf]  ;;  %v2735_v32 = vld [vmem:[%s4186_s3 + $0x2d4] sm:$0xf0]  ;;  %v1949_v38 = vor.u32 %v2647_v27, %v1948_v26  ;;  %v1940_v39 = vld [vmem:[%s4186_s3] sm:$0xf] }
  0x21   :  { %773 = vmatpush.bf16.msra.mxu2 %v1997_v15  ;;  %799 = vmatpush.bf16.msra.mxu0 %v2125_v24  ;;  %v2317_v15 = vor.u32 %v2739_v1, %v2316_v0  ;;  %v2681_v24 = vld [vmem:[%s4186_s3 + $0x124] sm:$0xf0]  ;;  %v2076_v35 = vld [vmem:[%s4186_s3 + $0x110] sm:$0xf]  ;;  %v2301_v43 = vor.u32 %v2735_v32, %v2300_v31  ;;  %v2668_v48 = vld [vmem:[%s4186_s3 + $0xc4] sm:$0xf] }
  0x22   :  { %816 = vmatpush.bf16.msrb.mxu1 %v2157_v33  ;;  %791 = vmatpush.bf16.msrb.mxu3 %v2021_v45  ;;  %v2670_v33 = vld [vmem:[%s4186_s3 + $0xd4] sm:$0xf]  ;;  %v2645_v40 = vld [vmem:[%s4186_s3 + $0x4] sm:$0xf0]  ;;  %v2252_v41 = vld [vmem:[%s4186_s3 + $0x270] sm:$0xf] }
  0x23   :  { %v2049_v44 = vor.u32 %v2670_v33, %v2046_v34  ;;  %v2733_v47 = vld [vmem:[%s4186_s3 + $0x2c4] sm:$0xf0]  ;;  %v2068_v50 = vld [vmem:[%s4186_s3 + $0x100] sm:$0xf]  ;;  %v1941_v52 = vor.u32 %v2645_v40, %v1940_v39  ;;  %v2658_v53 = vld [vmem:[%s4186_s3 + $0x74] sm:$0xf] }
  0x24   :  { %v2677_v51 = vld [vmem:[%s4186_s3 + $0x104] sm:$0xf0]  ;;  %v2244_v56 = vld [vmem:[%s4186_s3 + $0x260] sm:$0xf]  ;;  %v2731_v62 = vld [vmem:[%s4186_s3 + $0x2b4] sm:$0xf0] }
  0x25   :  { %774 = vmatpush.bf16.msra.mxu2 %v1989_v29  ;;  %800 = vmatpush.bf16.msra.mxu0 %v2117_v36  ;;  %v2057_v29 = vor.u32 %v2672_v22, %v2054_v23  ;;  %v2679_v36 = vld [vmem:[%s4186_s3 + $0x114] sm:$0xf0]  ;;  %v2721_v58 = vld [vmem:[%s4186_s3 + $0x264] sm:$0xf0]  ;;  %v2069_v60 = vor.u32 %v2677_v51, %v2068_v50  ;;  %v2666_v0 = vld [vmem:[%s4186_s3 + $0xb4] sm:$0xf] }
  0x26   :  { %817 = vmatpush.bf16.msrb.mxu1 %v2149_v46  ;;  %792 = vmatpush.bf16.msrb.mxu3 %v2013_v57  ;;  %v2077_v45 = vor.u32 %v2679_v36, %v2076_v35  ;;  %v2292_v46 = vld [vmem:[%s4186_s3 + $0x2c0] sm:$0xf]  ;;  %v2030_v1 = vld [vmem:[%s4186_s3 + $0xb8] sm:$0xf0]  ;;  %v2245_v2 = vor.u32 %v2721_v58, %v2244_v56  ;;  %v2236_v5 = vld [vmem:[%s4186_s3 + $0x250] sm:$0xf] }
  0x27   :  { %v2293_v57 = vor.u32 %v2733_v47, %v2292_v46  ;;  %v2719_v6 = vld [vmem:[%s4186_s3 + $0x254] sm:$0xf0]  ;;  %v2228_v11 = vld [vmem:[%s4186_s3 + $0x240] sm:$0xf]  ;;  %v2717_v12 = vld [vmem:[%s4186_s3 + $0x244] sm:$0xf0] }
  0x28   :  { %v2212_v18 = vld [vmem:[%s4186_s3 + $0x220] sm:$0xf]  ;;  %v2713_v21 = vld [vmem:[%s4186_s3 + $0x224] sm:$0xf0]  ;;  %v2204_v23 = vld [vmem:[%s4186_s3 + $0x210] sm:$0xf] }
  0x29   :  { %775 = vmatpush.bf16.msra.mxu2 %v1981_v42  ;;  %801 = vmatpush.bf16.msra.mxu0 %v2109_v49  ;;  %v2723_v42 = vld [vmem:[%s4186_s3 + $0x274] sm:$0xf0]  ;;  %v2038_v49 = vld [vmem:[%s4186_s3 + $0xc8] sm:$0xf0]  ;;  %v2213_v22 = vor.u32 %v2713_v21, %v2212_v18  ;;  %v2729_v26 = vld [vmem:[%s4186_s3 + $0x2a4] sm:$0xf0] }
  0x2a   :  { %818 = vmatpush.bf16.msrb.mxu1 %v2141_v59  ;;  %793 = vmatpush.bf16.msrb.mxu3 %v2005_v10  ;;  %v2253_v55 = vor.u32 %v2723_v42, %v2252_v41  ;;  %v2041_v59 = vor.u32 %v2668_v48, %v2038_v49  ;;  %v2237_v10 = vor.u32 %v2719_v6, %v2236_v5  ;;  %v2656_v27 = vld [vmem:[%s4186_s3 + $0x64] sm:$0xf]  ;;  %v2022_v31 = vld [vmem:[%s4186_s3 + $0xa8] sm:$0xf0]  ;;  %v2196_v34 = vld [vmem:[%s4186_s3 + $0x200] sm:$0xf] }
  0x2b   :  { %v2709_v35 = vld [vmem:[%s4186_s3 + $0x204] sm:$0xf0]  ;;  %v2727_v39 = vld [vmem:[%s4186_s3 + $0x294] sm:$0xf0]  ;;  %v2654_v41 = vld [vmem:[%s4186_s3 + $0x54] sm:$0xf] }
  0x2c   :  { %v2197_v36 = vor.u32 %v2709_v35, %v2196_v34  ;;  %v1982_v42 = vld [vmem:[%s4186_s3 + $0x58] sm:$0xf0]  ;;  %v2260_v47 = vld [vmem:[%s4186_s3 + $0x280] sm:$0xf]  ;;  %v2725_v48 = vld [vmem:[%s4186_s3 + $0x284] sm:$0xf0] }
  0x2d   :  { %776 = vmatpush.bf16.msra.mxu2 %v1973_v54  ;;  %802 = vmatpush.bf16.msra.mxu0 %v2101_v61  ;;  %v1998_v54 = vld [vmem:[%s4186_s3 + $0x78] sm:$0xf0]  ;;  %v2284_v61 = vld [vmem:[%s4186_s3 + $0x2b0] sm:$0xf]  ;;  %v2652_v49 = vld [vmem:[%s4186_s3 + $0x44] sm:$0xf]  ;;  %v2261_v50 = vor.u32 %v2725_v48, %v2260_v47 }
  0x2e   :  { %819 = vmatpush.bf16.msrb.mxu1 %v2133_v13  ;;  %838 = vmatpush.bf16.msra.mxu3 %v2317_v15  ;;  %v2001_v63 = vor.u32 %v2658_v53, %v1998_v54  ;;  %v2285_v4 = vor.u32 %v2731_v62, %v2284_v61  ;;  %v2229_v13 = vor.u32 %v2717_v12, %v2228_v11  ;;  %v2220_v15 = vld [vmem:[%s4186_s3 + $0x230] sm:$0xf]  ;;  %v1974_v51 = vld [vmem:[%s4186_s3 + $0x48] sm:$0xf0]  ;;  %v2650_v56 = vld [vmem:[%s4186_s3 + $0x34] sm:$0xf] }
  0x2f   :  { %1934 = vmatmul.msk.bf16.vlgmr.msrb.gmra.mxu2 %vm30_vm0, %v3031_v14  ;;  %1936 = vmatmul.msk.bf16.vlgmr.msrb.gmra.mxu0 %vm30_vm0, %v3031_v14  ;;  %v2084_v14 = vld [vmem:[%s4186_s3 + $0x120] sm:$0xf]  ;;  %v2006_v53 = vld [vmem:[%s4186_s3 + $0x88] sm:$0xf0]  ;;  %v1977_v54 = vor.u32 %v2652_v49, %v1974_v51  ;;  %v2646_v62 = vld [vmem:[%s4186_s3 + $0x14] sm:$0xf] }
  0x30   :  { %v2085_v30 = vor.u32 %v2681_v24, %v2084_v14  ;;  %v2711_v14 = vld [vmem:[%s4186_s3 + $0x214] sm:$0xf0]  ;;  %v2688_v18 = vld [vmem:[%s4186_s3 + $0x164] sm:$0xf]  ;;  %v2118_v21 = vld [vmem:[%s4186_s3 + $0x168] sm:$0xf0] }
  0x31   :  { %777 = vmatpush.bf16.msra.mxu2 %v1965_v9  ;;  %803 = vmatpush.bf16.msra.mxu0 %v2093_v17  ;;  %v2033_v9 = vor.u32 %v2666_v0, %v2030_v1  ;;  %v2205_v24 = vor.u32 %v2711_v14, %v2204_v23  ;;  %v2644_v1 = vld [vmem:[%s4186_s3 + $0x4] sm:$0xf]  ;;  %v2706_v23 = vld [vmem:[%s4186_s3 + $0x1f4] sm:$0xf]  ;;  %v2190_v14 = vld [vmem:[%s4186_s3 + $0x1f8] sm:$0xf0] }
  0x32   :  { %864 = vmatpush.bf16.msra.mxu1 %v2065_v16  ;;  %839 = vmatpush.bf16.msra.mxu3 %v2309_v28  ;;  %v2715_v16 = vld [vmem:[%s4186_s3 + $0x234] sm:$0xf0]  ;;  %v2193_v34 = vor.u32 %v2706_v23, %v2190_v14  ;;  %v2174_v51 = vld [vmem:[%s4186_s3 + $0x1d8] sm:$0xf0]  ;;  %v2722_v14 = vld [vmem:[%s4186_s3 + $0x274] sm:$0xf] }
  0x33   :  { %v2221_v17 = vor.u32 %v2715_v16, %v2220_v15  ;;  %vm1443_vm12 = vcmask 523264   ;;  %vm1798_vm13 = vcmask 1040384   ;;  %vm1800_vm14 = vcmask 1041408   ;;  %s2874_s25 = smov 768   ;;  %s2875_s26 = smov 48  }
  0x34   :  { %vm1809_vm15 = vcmask 1042433  }
  0x35   :  { %778 = vmatpush.bf16.msra.mxu2 %v1957_v25  ;;  %804 = vmatpush.bf16.msra.mxu0 %v2085_v30  ;;  %v2276_v25 = vld [vmem:[%s4186_s3 + $0x2a0] sm:$0xf]  ;;  %v2664_v30 = vld [vmem:[%s4186_s3 + $0xa4] sm:$0xf] }
  0x36   :  { %865 = vmatpush.bf16.msra.mxu1 %v2057_v29  ;;  %840 = vmatpush.bf16.msra.mxu3 %v2301_v43  ;;  %v2277_v28 = vor.u32 %v2729_v26, %v2276_v25  ;;  %v1990_v29 = vld [vmem:[%s4186_s3 + $0x68] sm:$0xf0]  ;;  %v2025_v33 = vor.u32 %v2664_v30, %v2022_v31  ;;  %v1985_v43 = vor.u32 %v2654_v41, %v1982_v42  ;;  %v2738_v26 = vld [vmem:[%s4186_s3 + $0x2f4] sm:$0xf]  ;;  %v2110_v31 = vld [vmem:[%s4186_s3 + $0x158] sm:$0xf0] }
  0x37   :  { %v1993_v32 = vor.u32 %v2656_v27, %v1990_v29  ;;  %v2121_v25 = vor.u32 %v2688_v18, %v2118_v21  ;;  %v2318_v27 = vld [vmem:[%s4186_s3 + $0x2f8] sm:$0xf0]  ;;  %v2686_v30 = vld [vmem:[%s4186_s3 + $0x154] sm:$0xf]  ;;  %v2086_v18 = vld [vmem:[%s4186_s3 + $0x128] sm:$0xf0] }
  0x38   :  { %v2113_v42 = vor.u32 %v2686_v30, %v2110_v31  ;;  %v2678_v31 = vld [vmem:[%s4186_s3 + $0x114] sm:$0xf] }
  0x39   :  { %779 = vmatpush.bf16.msra.mxu2 %v1949_v38  ;;  %805 = vmatpush.bf16.msra.mxu0 %v2077_v45  ;;  %v2268_v38 = vld [vmem:[%s4186_s3 + $0x290] sm:$0xf]  ;;  %v2014_v45 = vld [vmem:[%s4186_s3 + $0x98] sm:$0xf0] }
  0x3a   :  { %866 = vmatpush.bf16.msra.mxu1 %v2049_v44  ;;  %841 = vmatpush.bf16.msra.mxu3 %v2293_v57  ;;  %v2269_v40 = vor.u32 %v2727_v39, %v2268_v38  ;;  %v2662_v44 = vld [vmem:[%s4186_s3 + $0x94] sm:$0xf]  ;;  %v1966_v57 = vld [vmem:[%s4186_s3 + $0x38] sm:$0xf0]  ;;  %v2704_v38 = vld [vmem:[%s4186_s3 + $0x1e4] sm:$0xf] }
  0x3b   :  { %v2017_v46 = vor.u32 %v2662_v44, %v2014_v45  ;;  %v1969_v58 = vor.u32 %v2650_v56, %v1966_v57  ;;  %v2182_v39 = vld [vmem:[%s4186_s3 + $0x1e8] sm:$0xf0]  ;;  %v2684_v45 = vld [vmem:[%s4186_s3 + $0x144] sm:$0xf]  ;;  %v2682_v57 = vld [vmem:[%s4186_s3 + $0x134] sm:$0xf] }
  0x3c   :  { %v2310_v44 = vld [vmem:[%s4186_s3 + $0x2e8] sm:$0xf0]  ;;  %v2185_v47 = vor.u32 %v2704_v38, %v2182_v39 }
  0x3d   :  { %780 = vmatpush.bf16.msra.mxu2 %v1941_v52  ;;  %806 = vmatpush.bf16.msra.mxu0 %v2069_v60  ;;  %v2660_v52 = vld [vmem:[%s4186_s3 + $0x84] sm:$0xf]  ;;  %v1958_v60 = vld [vmem:[%s4186_s3 + $0x28] sm:$0xf0] }
  0x3e   :  { %867 = vmatpush.bf16.msra.mxu1 %v2041_v59  ;;  %842 = vmatpush.bf16.msra.mxu3 %v2285_v4  ;;  %v2648_v59 = vld [vmem:[%s4186_s3 + $0x24] sm:$0xf] }
  0x3f   :  { %v1961_v61 = vor.u32 %v2648_v59, %v1958_v60  ;;  %v3372_v4 = vld [vmem:[%s4185_s2] sm:$0x3f] }
  0x40   :  { %v3375_v6 = vperm.slane %v3372_v4, 0  ;;  %v3446_v48 = vperm.slane %v3372_v4, 4  ;;  %v3461_v56 = vperm.slane %v3372_v4, 5 }
  0x41   :  { %825 = vmatpush.bf16.msrb.mxu2 %v2253_v55  ;;  %851 = vmatpush.bf16.msrb.mxu0 %v2001_v63  ;;  %v2009_v55 = vor.u32 %v2660_v52, %v2006_v53  ;;  %v1950_v63 = vld [vmem:[%s4186_s3 + $0x18] sm:$0xf0] }
  0x42   :  { %868 = vmatpush.bf16.msra.mxu1 %v2033_v9  ;;  %843 = vmatpush.bf16.msra.mxu3 %v2277_v28  ;;  %v1953_v0 = vor.u32 %v2646_v62, %v1950_v63  ;;  %v2690_v9 = vld [vmem:[%s4186_s3 + $0x174] sm:$0xf] }
  0x45   :  { %826 = vmatpush.bf16.msrb.mxu2 %v2245_v2  ;;  %852 = vmatpush.bf16.msrb.mxu0 %v1993_v32  ;;  %v1942_v2 = vld [vmem:[%s4186_s3 + $0x8] sm:$0xf0] }
  0x46   :  { %869 = vmatpush.bf16.msra.mxu1 %v2025_v33  ;;  %844 = vmatpush.bf16.msra.mxu3 %v2269_v40  ;;  %v1945_v5 = vor.u32 %v2644_v1, %v1942_v2  ;;  %v2166_v1 = vld [vmem:[%s4186_s3 + $0x1c8] sm:$0xf0] }
  0x49   :  { %827 = vmatpush.bf16.msrb.mxu2 %v2237_v10  ;;  %853 = vmatpush.bf16.msrb.mxu0 %v1985_v43  ;;  %v2126_v10 = vld [vmem:[%s4186_s3 + $0x178] sm:$0xf0]  ;;  %v2736_v43 = vld [vmem:[%s4186_s3 + $0x2e4] sm:$0xf] }
  0x4a   :  { %870 = vmatpush.bf16.msra.mxu1 %v2017_v46  ;;  %845 = vmatpush.bf16.msra.mxu3 %v2261_v50  ;;  %v2129_v15 = vor.u32 %v2690_v9, %v2126_v10  ;;  %v2102_v46 = vld [vmem:[%s4186_s3 + $0x148] sm:$0xf0]  ;;  %v2313_v49 = vor.u32 %v2736_v43, %v2310_v44  ;;  %v2702_v50 = vld [vmem:[%s4186_s3 + $0x1d4] sm:$0xf]  ;;  %v2720_v43 = vld [vmem:[%s4186_s3 + $0x264] sm:$0xf] }
  0x4b   :  { %v2105_v53 = vor.u32 %v2684_v45, %v2102_v46  ;;  %v2294_v9 = vld [vmem:[%s4186_s3 + $0x2c8] sm:$0xf0]  ;;  %v2728_v46 = vld [vmem:[%s4186_s3 + $0x2a4] sm:$0xf] }
  0x4c   :  { %v2246_v45 = vld [vmem:[%s4186_s3 + $0x268] sm:$0xf0] }
  0x4d   :  { %828 = vmatpush.bf16.msrb.mxu2 %v2229_v13  ;;  %854 = vmatpush.bf16.msrb.mxu0 %v1977_v54  ;;  %v2734_v54 = vld [vmem:[%s4186_s3 + $0x2d4] sm:$0xf] }
  0x4e   :  { %871 = vmatpush.bf16.msra.mxu1 %v2009_v55  ;;  %v2302_v55 = vld [vmem:[%s4186_s3 + $0x2d8] sm:$0xf0] }
  0x4f   :  { %v2305_v63 = vor.u32 %v2734_v54, %v2302_v55  ;;  %v2694_v54 = vld [vmem:[%s4186_s3 + $0x194] sm:$0xf]  ;;  %v2142_v55 = vld [vmem:[%s4186_s3 + $0x198] sm:$0xf0] }
  0x51   :  { %829 = vmatpush.bf16.msrb.mxu2 %v2221_v17  ;;  %855 = vmatpush.bf16.msrb.mxu0 %v1969_v58  ;;  %v3389_v17 = vperm.slane %v3372_v4, 1  ;;  %v2094_v58 = vld [vmem:[%s4186_s3 + $0x138] sm:$0xf0] }
  0x52   :  { %v2097_v2 = vor.u32 %v2682_v57, %v2094_v58  ;;  %v2718_v57 = vld [vmem:[%s4186_s3 + $0x254] sm:$0xf] }
  0x55   :  { %830 = vmatpush.bf16.msrb.mxu2 %v2213_v22  ;;  %856 = vmatpush.bf16.msrb.mxu0 %v1961_v61  ;;  %v3398_v22 = vperm.slane %v3372_v4, 3  ;;  %v2177_v61 = vor.u32 %v2702_v50, %v2174_v51  ;;  %v2070_v50 = vld [vmem:[%s4186_s3 + $0x108] sm:$0xf0] }
  0x59   :  { %831 = vmatpush.bf16.msrb.mxu2 %v2205_v24  ;;  %857 = vmatpush.bf16.msrb.mxu0 %v1953_v0  ;;  %v2700_v0 = vld [vmem:[%s4186_s3 + $0x1c4] sm:$0xf] }
  0x5a   :  { %v2169_v21 = vor.u32 %v2700_v0, %v2166_v1  ;;  %v2692_v1 = vld [vmem:[%s4186_s3 + $0x184] sm:$0xf] }
  0x5d   :  { %832 = vmatpush.bf16.msrb.mxu2 %v2197_v36  ;;  %858 = vmatpush.bf16.msrb.mxu0 %v1945_v5  ;;  %v2321_v36 = vor.u32 %v2738_v26, %v2318_v27  ;;  %v2732_v5 = vld [vmem:[%s4186_s3 + $0x2c4] sm:$0xf]  ;;  %v2254_v26 = vld [vmem:[%s4186_s3 + $0x278] sm:$0xf0]  ;;  %v2730_v27 = vld [vmem:[%s4186_s3 + $0x2b4] sm:$0xf] }
  0x5e   :  { %v2297_v23 = vor.u32 %v2732_v5, %v2294_v9  ;;  %v2257_v38 = vor.u32 %v2722_v14, %v2254_v26  ;;  %v2716_v5 = vld [vmem:[%s4186_s3 + $0x244] sm:$0xf]  ;;  %v2230_v9 = vld [vmem:[%s4186_s3 + $0x248] sm:$0xf0] }
  0x9c   :  { %v122_v11 = vpop.f32.mrf.mxu0 }
  0x9d   :  { %v123_v12 = vadd.f32 %v122_v11, %v3375_v6  ;;  %v3384_v13 = vpop.f32.mrf.mxu1  ;;  %v3485_v11 = vperm.slane %v3372_v4, 2  ;;  %v2698_v4 = vld [vmem:[%s4186_s3 + $0x1b4] sm:$0xf] }
  0x9f   :  { %v3386_v16 = vpack.c.bf16 %v123_v12, %v123_v12  ;;  %v188_v12 = vadd.f32 %v3384_v13, %v3461_v56  ;;  %v2158_v13 = vld [vmem:[%s4186_s3 + $0x1b8] sm:$0xf0] }
  0xa1   :  { %781 = vmatmul.bf16.vlgmr.msra.gmra.mxu2 %v3386_v16  ;;  %v3515_v30 = vpack.c.bf16 %v188_v12, %v188_v12  ;;  %v2724_v12 = vld [vmem:[%s4186_s3 + $0x284] sm:$0xf] }
  0xa2   :  { %v135_v24 = vpop.f32.mrf.mxu2  ;;  %877 = vmatpush.bf16.msra.mxu2 %v2129_v15  ;;  %v2680_v15 = vld [vmem:[%s4186_s3 + $0x124] sm:$0xf] }
  0xa3   :  { %v136_v28 = vadd.f32 %v135_v24, %v3389_v17  ;;  %v161_v29 = vpop.f32.mrf.mxu3 }
  0xa4   :  { %v162_v32 = vadd.f32 %v161_v29, %v3398_v22  ;;  %v124_v33 = vpop.f32.mrf.mxu0 }
  0xa5   :  { %v3421_v35 = vpack.c.bf16 %v136_v28, %v136_v28  ;;  %v189_v40 = vpop.f32.mrf.mxu1  ;;  %v2286_v28 = vld [vmem:[%s4186_s3 + $0x2b8] sm:$0xf0] }
  0xa6   :  { %v3429_v41 = vpack.c.bf16 %v162_v32, %v162_v32  ;;  %878 = vmatpush.bf16.msra.mxu2 %v2121_v25  ;;  %v2089_v25 = vor.u32 %v2680_v15, %v2086_v18  ;;  %v2078_v32 = vld [vmem:[%s4186_s3 + $0x118] sm:$0xf0]  ;;  %v2289_v39 = vor.u32 %v2730_v27, %v2286_v28  ;;  %v2696_v40 = vld [vmem:[%s4186_s3 + $0x1a4] sm:$0xf]  ;;  %v2262_v15 = vld [vmem:[%s4186_s3 + $0x288] sm:$0xf0] }
  0xa7   :  { %794 = vmatmul.bf16.vlgmr.msrb.gmra.mxu3 %v3421_v35  ;;  %v2081_v44 = vor.u32 %v2678_v31, %v2078_v32  ;;  %v2710_v27 = vld [vmem:[%s4186_s3 + $0x214] sm:$0xf]  ;;  %v2206_v28 = vld [vmem:[%s4186_s3 + $0x218] sm:$0xf0] }
  0xa8   :  { %820 = vmatmul.bf16.vlgmr.msrb.gmra.mxu1 %v3429_v41  ;;  %890 = vmatpush.bf16.msrb.mxu3 %v2193_v34  ;;  %v2161_v34 = vor.u32 %v2698_v4, %v2158_v13  ;;  %v2714_v4 = vld [vmem:[%s4186_s3 + $0x234] sm:$0xf]  ;;  %v2222_v13 = vld [vmem:[%s4186_s3 + $0x238] sm:$0xf0] }
  0xa9   :  { %916 = vmatpush.bf16.msrb.mxu1 %v2321_v36  ;;  %v2225_v14 = vor.u32 %v2714_v4, %v2222_v13 }
  0xaa   :  { %v137_v52 = vpop.f32.mrf.mxu2  ;;  %879 = vmatpush.bf16.msra.mxu2 %v2113_v42  ;;  %v2150_v42 = vld [vmem:[%s4186_s3 + $0x1a8] sm:$0xf0] }
  0xab   :  { %v163_v59 = vpop.f32.mrf.mxu3  ;;  %v2153_v51 = vor.u32 %v2696_v40, %v2150_v42  ;;  %v2249_v52 = vor.u32 %v2720_v43, %v2246_v45  ;;  %v2773_v45 = vld [vmem:[%s4187_s4 + $0x104] sm:$0xf0] }
  0xac   :  { %v174_v60 = vpop.f32.mrf.mxu0  ;;  %891 = vmatpush.bf16.msrb.mxu3 %v2185_v47  ;;  %v2278_v47 = vld [vmem:[%s4186_s3 + $0x2a8] sm:$0xf0]  ;;  %v2238_v59 = vld [vmem:[%s4186_s3 + $0x258] sm:$0xf0] }
  0xad   :  { %v175_v62 = vadd.f32 %v174_v60, %v3446_v48  ;;  %917 = vmatpush.bf16.msrb.mxu1 %v2313_v49  ;;  %v2676_v49 = vld [vmem:[%s4186_s3 + $0x104] sm:$0xf]  ;;  %v2726_v60 = vld [vmem:[%s4186_s3 + $0x294] sm:$0xf] }
  0xae   :  { %880 = vmatpush.bf16.msra.mxu2 %v2105_v53  ;;  %v2281_v53 = vor.u32 %v2728_v46, %v2278_v47 }
  0xaf   :  { %v3482_v10 = vpack.c.bf16 %v175_v62, %v175_v62  ;;  %v2145_v62 = vor.u32 %v2694_v54, %v2142_v55 }
  0xb0   :  { %892 = vmatpush.bf16.msrb.mxu3 %v2177_v61  ;;  %v2270_v61 = vld [vmem:[%s4186_s3 + $0x298] sm:$0xf0] }
  0xb1   :  { %918 = vmatpush.bf16.msrb.mxu1 %v2305_v63  ;;  %833 = vmatmul.bf16.vlgmr.msrb.gmra.mxu2 %v3482_v10  ;;  %v2241_v63 = vor.u32 %v2718_v57, %v2238_v59  ;;  %v2273_v0 = vor.u32 %v2726_v60, %v2270_v61  ;;  %v2396_v61 = vld [vmem:[%s4187_s4 + $0x90] sm:$0xf] }
  0xb2   :  { %v148_v24 = vpop.f32.mrf.mxu2  ;;  %881 = vmatpush.bf16.msra.mxu2 %v2097_v2  ;;  %v2134_v2 = vld [vmem:[%s4186_s3 + $0x188] sm:$0xf0] }
  0xb3   :  { %v149_v29 = vadd.f32 %v148_v24, %v3485_v11  ;;  %v2137_v18 = vor.u32 %v2692_v1, %v2134_v2  ;;  %v2712_v24 = vld [vmem:[%s4186_s3 + $0x224] sm:$0xf]  ;;  %v2470_v2 = vld [vmem:[%s4187_s4 + $0x138] sm:$0xf0] }
  0xb4   :  { %893 = vmatpush.bf16.msrb.mxu3 %v2169_v21  ;;  %v176_v33 = vpop.f32.mrf.mxu0  ;;  %v2233_v21 = vor.u32 %v2716_v5, %v2230_v9  ;;  %v2776_v1 = vld [vmem:[%s4187_s4 + $0x124] sm:$0xf] }
  0xb5   :  { %v193_v36 = vpack.c.bf16 %v149_v29, %v149_v29  ;;  %919 = vmatpush.bf16.msrb.mxu1 %v2297_v23  ;;  %v2265_v23 = vor.u32 %v2724_v12, %v2262_v15  ;;  %v2209_v29 = vor.u32 %v2710_v27, %v2206_v28  ;;  %v2492_v33 = vld [vmem:[%s4187_s4 + $0x150] sm:$0xf]  ;;  %v2473_v9 = vor.u32 %v2776_v1, %v2470_v2 }
  0xb6   :  { %882 = vmatpush.bf16.msra.mxu2 %v2089_v25  ;;  %v2214_v25 = vld [vmem:[%s4186_s3 + $0x228] sm:$0xf0]  ;;  %v2348_v28 = vld [vmem:[%s4187_s4 + $0x30] sm:$0xf] }
  0xb7   :  { %807 = vmatmul.bf16.vlgmr.msra.gmra.mxu0 %v193_v36  ;;  %846 = vmatmul.bf16.vlgmr.msra.gmra.mxu3 %v3515_v30  ;;  %v2217_v26 = vor.u32 %v2712_v24, %v2214_v25  ;;  %v2770_v24 = vld [vmem:[%s4187_s4 + $0xf4] sm:$0xf]  ;;  %v2446_v25 = vld [vmem:[%s4187_s4 + $0x108] sm:$0xf0] }
  0xb8   :  { %872 = vmatmul.bf16.vlgmr.msra.gmra.mxu1 %v3421_v35  ;;  %894 = vmatpush.bf16.msrb.mxu3 %v2161_v34  ;;  %v2073_v35 = vor.u32 %v2676_v49, %v2070_v50  ;;  %v2785_v34 = vld [vmem:[%s4187_s4 + $0x164] sm:$0xf0]  ;;  %v2449_v27 = vor.u32 %v2770_v24, %v2446_v25  ;;  %v2765_v24 = vld [vmem:[%s4187_s4 + $0xcc] sm:$0xf] }
  0xb9   :  { %903 = vmatpush.bf16.msra.mxu0 %v2257_v38  ;;  %920 = vmatpush.bf16.msrb.mxu1 %v2289_v39  ;;  %v2468_v39 = vld [vmem:[%s4187_s4 + $0x120] sm:$0xf] }
  0xba   :  { %v150_v58 = vpop.f32.mrf.mxu2  ;;  %883 = vmatpush.bf16.msra.mxu2 %v2081_v44  ;;  %v2444_v44 = vld [vmem:[%s4187_s4 + $0xf0] sm:$0xf] }
  0xbb   :  { %v2445_v46 = vor.u32 %v2773_v45, %v2444_v44  ;;  %v2782_v58 = vld [vmem:[%s4187_s4 + $0x154] sm:$0xf]  ;;  %v2398_v44 = vld [vmem:[%s4187_s4 + $0xa8] sm:$0xf0]  ;;  %v2783_v45 = vld [vmem:[%s4187_s4 + $0x15c] sm:$0xf] }
  0xbc   :  { %895 = vmatpush.bf16.msrb.mxu3 %v2153_v51 }
  0xbd   :  { %904 = vmatpush.bf16.msra.mxu0 %v2249_v52  ;;  %921 = vmatpush.bf16.msrb.mxu1 %v2281_v53  ;;  %v2420_v52 = vld [vmem:[%s4187_s4 + $0xc0] sm:$0xf]  ;;  %v2767_v53 = vld [vmem:[%s4187_s4 + $0xd4] sm:$0xf0] }
  0xbe   :  { %884 = vmatpush.bf16.msra.mxu2 %v2073_v35  ;;  %v2421_v57 = vor.u32 %v2767_v53, %v2420_v52  ;;  %v2494_v35 = vld [vmem:[%s4187_s4 + $0x168] sm:$0xf0] }
  0xbf   :  { %v2497_v59 = vor.u32 %v2782_v58, %v2494_v35  ;;  %v2777_v52 = vld [vmem:[%s4187_s4 + $0x12c] sm:$0xf] }
  0xc0   :  { %896 = vmatpush.bf16.msrb.mxu3 %v2145_v62  ;;  %v2761_v62 = vld [vmem:[%s4187_s4 + $0xa4] sm:$0xf0] }
  0xc1   :  { %905 = vmatpush.bf16.msra.mxu0 %v2241_v63  ;;  %922 = vmatpush.bf16.msrb.mxu1 %v2273_v0  ;;  %v2397_v0 = vor.u32 %v2761_v62, %v2396_v61 }
  0xc2   :  { %885 = vmatmul.bf16.vlgmr.msra.gmra.mxu2 %v193_v36  ;;  %v2493_v36 = vor.u32 %v2785_v34, %v2492_v33 }
  0xc4   :  { %897 = vmatpush.bf16.msrb.mxu3 %v2137_v18  ;;  %1447 = vmatpush.bf16.msrb.mxu2 %v2493_v36 }
  0xc5   :  { %906 = vmatpush.bf16.msra.mxu0 %v2233_v21  ;;  %923 = vmatpush.bf16.msrb.mxu1 %v2265_v23  ;;  %v2372_v21 = vld [vmem:[%s4187_s4 + $0x60] sm:$0xf]  ;;  %v2755_v23 = vld [vmem:[%s4187_s4 + $0x74] sm:$0xf0] }
  0xc7   :  { %859 = vmatmul.bf16.vlgmr.msrb.gmra.mxu0 %v3386_v16  ;;  %898 = vmatmul.bf16.vlgmr.msrb.gmra.mxu3 %v3429_v41  ;;  %v2708_v16 = vld [vmem:[%s4186_s3 + $0x204] sm:$0xf]  ;;  %v2198_v41 = vld [vmem:[%s4186_s3 + $0x208] sm:$0xf0] }
  0xc8   :  { %924 = vmatmul.bf16.vlgmr.msrb.gmra.mxu1 %v3515_v30  ;;  %v2201_v30 = vor.u32 %v2708_v16, %v2198_v41 }
  0xc9   :  { %907 = vmatpush.bf16.msra.mxu0 %v2225_v14  ;;  %v2373_v14 = vor.u32 %v2755_v23, %v2372_v21 }
  0xcd   :  { %908 = vmatpush.bf16.msra.mxu0 %v2217_v26 }
  0xd1   :  { %909 = vmatpush.bf16.msra.mxu0 %v2209_v29  ;;  %v2749_v29 = vld [vmem:[%s4187_s4 + $0x44] sm:$0xf0] }
  0xd2   :  { %v2349_v41 = vor.u32 %v2749_v29, %v2348_v28 }
  0xd5   :  { %910 = vmatpush.bf16.msra.mxu0 %v2201_v30  ;;  %v2764_v30 = vld [vmem:[%s4187_s4 + $0xc4] sm:$0xf] }
  0xd8   :  { %911 = vmatmul.bf16.vlgmr.msra.gmra.mxu0 %v3482_v10  ;;  %v2779_v10 = vld [vmem:[%s4187_s4 + $0x134] sm:$0xf0] }
  0xd9   :  { %v2469_v42 = vor.u32 %v2779_v10, %v2468_v39  ;;  %1473 = vmatpush.bf16.msrb.mxu0 %v2497_v59  ;;  %v2743_v39 = vld [vmem:[%s4187_s4 + $0x14] sm:$0xf0] }
  0xdb   :  { %1448 = vmatpush.bf16.msrb.mxu2 %v2469_v42  ;;  %v2758_v42 = vld [vmem:[%s4187_s4 + $0x94] sm:$0xf] }
  0xdd   :  { %1474 = vmatpush.bf16.msrb.mxu0 %v2473_v9  ;;  %v2771_v9 = vld [vmem:[%s4187_s4 + $0xfc] sm:$0xf] }
  0xdf   :  { %1449 = vmatpush.bf16.msrb.mxu2 %v2445_v46  ;;  %v2401_v46 = vor.u32 %v2758_v42, %v2398_v44  ;;  %v2759_v44 = vld [vmem:[%s4187_s4 + $0x9c] sm:$0xf] }
  0xe1   :  { %1475 = vmatpush.bf16.msrb.mxu0 %v2449_v27 }
  0xe3   :  { %1450 = vmatpush.bf16.msrb.mxu2 %v2421_v57  ;;  %v2478_v57 = vld [vmem:[%s4187_s4 + $0x140] sm:$0xf0] }
  0xe4   :  { %v2481_v35 = vor.u32 %v2777_v52, %v2478_v57  ;;  %v2590_v52 = vld [vmem:[%s4187_s4 + $0x228] sm:$0xf0] }
  0xe7   :  { %1451 = vmatpush.bf16.msrb.mxu2 %v2397_v0  ;;  %v2350_v0 = vld [vmem:[%s4187_s4 + $0x48] sm:$0xf0] }
  0xeb   :  { %1452 = vmatpush.bf16.msrb.mxu2 %v2373_v14  ;;  %v2326_v14 = vld [vmem:[%s4187_s4 + $0x18] sm:$0xf0] }
  0xef   :  { %1453 = vmatpush.bf16.msrb.mxu2 %v2349_v41 }
 0x124   :  { %v782_v31 = vpop.f32.mrf.mxu2 }
 0x125   :  { %v821_v32 = vpop.f32.mrf.mxu1 }
 0x12a   :  { %v795_v38 = vpop.f32.mrf.mxu3 }
 0x12b   :  { %v796_v49 = vadd.f32 %v795_v38, %v782_v31  ;;  %v2324_v38 = vld [vmem:[%s4187_s4] sm:$0xf] }
 0x12c   :  { %v784_v40 = vpop.f32.mrf.mxu2 }
 0x12d   :  { %v823_v43 = vpop.f32.mrf.mxu1 }
 0x12e   :  { %v2325_v43 = vor.u32 %v2743_v39, %v2324_v38  ;;  %v2807_v38 = vld [vmem:[%s4187_s4 + $0x21c] sm:$0xf] }
 0x130   :  { %1454 = vmatpush.bf16.msrb.mxu2 %v2325_v43  ;;  %v2598_v43 = vld [vmem:[%s4187_s4 + $0x230] sm:$0xf0] }
 0x132   :  { %v797_v47 = vpop.f32.mrf.mxu3 }
 0x133   :  { %v2502_v47 = vld [vmem:[%s4187_s4 + $0x170] sm:$0xf0] }
 0x134   :  { %v808_v50 = vpop.f32.mrf.mxu0  ;;  %v834_v51 = vpop.f32.mrf.mxu2 }
 0x135   :  { %v809_v54 = vadd.f32 %v808_v50, %v796_v49  ;;  %v3637_v55 = vpop.f32.mrf.mxu1  ;;  %v2505_v49 = vor.u32 %v2783_v45, %v2502_v47  ;;  %v2752_v50 = vld [vmem:[%s4187_s4 + $0x64] sm:$0xf]  ;;  %v2406_v45 = vld [vmem:[%s4187_s4 + $0xb0] sm:$0xf0] }
 0x137   :  { %v822_v60 = vadd.f32 %v821_v32, %v809_v54  ;;  %v2422_v32 = vld [vmem:[%s4187_s4 + $0xd8] sm:$0xf0]  ;;  %1525 = vmatpush.bf16.msra.mxu2 %v2505_v49  ;;  %v2601_v49 = vor.u32 %v2807_v38, %v2598_v43  ;;  %v2789_v43 = vld [vmem:[%s4187_s4 + $0x18c] sm:$0xf] }
 0x138   :  { %v2425_v34 = vor.u32 %v2764_v30, %v2422_v32 }
 0x139   :  { %v835_v63 = vadd.f32 %v834_v51, %v822_v60  ;;  %v2374_v51 = vld [vmem:[%s4187_s4 + $0x78] sm:$0xf0] }
 0x13a   :  { %v847_v5 = vpop.f32.mrf.mxu3  ;;  %1476 = vmatpush.bf16.msrb.mxu0 %v2425_v34  ;;  %v2377_v54 = vor.u32 %v2752_v50, %v2374_v51  ;;  %v2409_v50 = vor.u32 %v2759_v44, %v2406_v45  ;;  %v2806_v51 = vld [vmem:[%s4187_s4 + $0x214] sm:$0xf]  ;;  %v2526_v45 = vld [vmem:[%s4187_s4 + $0x1a0] sm:$0xf0] }
 0x13b   :  { %v3657_v12 = vadd.f32 %v847_v5, %v835_v63  ;;  %v2746_v63 = vld [vmem:[%s4187_s4 + $0x34] sm:$0xf]  ;;  %1526 = vmatpush.bf16.msra.mxu2 %v2481_v35  ;;  %v2564_v35 = vld [vmem:[%s4187_s4 + $0x1e0] sm:$0xf] }
 0x13c   :  { %v810_v15 = vpop.f32.mrf.mxu0  ;;  %v836_v18 = vpop.f32.mrf.mxu2  ;;  %v2353_v5 = vor.u32 %v2746_v63, %v2350_v0 }
 0x13d   :  { %v3666_v4 = vmul.f32 0.70710677, %v3657_v12  ;;  %v875_v13 = vpop.f32.mrf.mxu1  ;;  %v2454_v15 = vld [vmem:[%s4187_s4 + $0x110] sm:$0xf0] }
 0x13e   :  { %1477 = vmatpush.bf16.msrb.mxu0 %v2401_v46  ;;  %v2457_v23 = vor.u32 %v2771_v9, %v2454_v15  ;;  %v2566_v9 = vld [vmem:[%s4187_s4 + $0x1f8] sm:$0xf0] }
 0x13f   :  { %v3675_v26 = vand.u32 2147483647, %v3666_v4  ;;  %vm999_vm6 = vcmp.ge.f32.partialorder %v3666_v4, 0.0  ;;  %v2548_v4 = vld [vmem:[%s4187_s4 + $0x1b8] sm:$0xf] }
 0x140   :  { %1527 = vmatpush.bf16.msra.mxu2 %v2457_v23 }
 0x141   :  { %v935_v16 = vmul.f32 0.3275911, %v3675_v26  ;;  %v987_v30 = vsub.f32 0.0, %v3675_v26 }
 0x142   :  { %v849_v31 = vpop.f32.mrf.mxu3  ;;  %1478 = vmatpush.bf16.msrb.mxu0 %v2377_v54 }
 0x143   :  { %v937_v33 = vadd.f32 1.0, %v935_v16  ;;  %v2430_v16 = vld [vmem:[%s4187_s4 + $0xe0] sm:$0xf0]  ;;  %v989_v54 = vmul.f32 %v987_v30, %v3675_v26  ;;  %v2358_v30 = vld [vmem:[%s4187_s4 + $0x50] sm:$0xf0] }
 0x144   :  { %v860_v36 = vpop.f32.mrf.mxu0  ;;  %v2433_v31 = vor.u32 %v2765_v24, %v2430_v16  ;;  %v2574_v26 = vld [vmem:[%s4187_s4 + $0x200] sm:$0xf0]  ;;  %v2795_v24 = vld [vmem:[%s4187_s4 + $0x1bc] sm:$0xf] }
 0x145   :  { %2815 = vrcp.f32 %v937_v33  ;;  %v886_v10 = vpop.f32.mrf.mxu2  ;;  %v3696_v40 = vpop.f32.mrf.mxu1  ;;  %v874_v2 = vadd.f32 %v3637_v55, %v860_v36  ;;  %v948_v18 = vand.u32 2147483647, %v937_v33  ;;  %v950_v21 = vand.u32 2147483648, %v937_v33  ;;  %v2740_v55 = vld [vmem:[%s4187_s4 + $0x4] sm:$0xf] }
 0x146   :  { %1479 = vmatpush.bf16.msrb.mxu0 %v2353_v5  ;;  %vm944_vm3 = vweird.f32 %v937_v33  ;;  %v2329_v29 = vor.u32 %v2740_v55, %v2326_v14  ;;  %v2809_v36 = vld [vmem:[%s4187_s4 + $0x224] sm:$0xf0]  ;;  %1528 = vmatpush.bf16.msra.mxu2 %v2433_v31  ;;  %v2800_v5 = vld [vmem:[%s4187_s4 + $0x1e4] sm:$0xf]  ;;  %v2540_v55 = vld [vmem:[%s4187_s4 + $0x1b0] sm:$0xf] }
 0x147   :  { %v887_v27 = vadd.f32 %v886_v10, %v874_v2  ;;  %vm949_vm5 = vcmp.eq.f32.partialorder %v948_v18, 8.507059e+37  ;;  %v951_v41 = vor.u32 1.1754944e-38, %v950_v21  ;;  %v991_v18 = vmul.f32 1.442695, %v989_v54  ;;  %v2797_v14 = vld [vmem:[%s4187_s4 + $0x1c4] sm:$0xf0] }
 0x148   :  { %v2569_v23 = vor.u32 %v2800_v5, %v2566_v9  ;;  %v2794_v31 = vld [vmem:[%s4187_s4 + $0x1b4] sm:$0xf]  ;;  %v2334_v54 = vld [vmem:[%s4187_s4 + $0x20] sm:$0xf0]  ;;  %v2780_v5 = vld [vmem:[%s4187_s4 + $0x13c] sm:$0xf0] }
 0x149   :  { %2817 = vpow2.f32 %v991_v18  ;;  %v2572_v18 = vld [vmem:[%s4187_s4 + $0x1e8] sm:$0xf] }
 0x14a   :  { %v899_v53 = vpop.f32.mrf.mxu3  ;;  %1480 = vmatpush.bf16.msrb.mxu0 %v2329_v29  ;;  %1529 = vmatpush.bf16.msra.mxu2 %v2409_v50  ;;  %v2550_v29 = vld [vmem:[%s4187_s4 + $0x1d0] sm:$0xf0]  ;;  %v2786_v50 = vld [vmem:[%s4187_s4 + $0x16c] sm:$0xf0] }
 0x14b   :  { %v2816_v58 = vpop.eup %2815  ;;  %v900_v34 = vadd.f32 %v899_v53, %v887_v27  ;;  %v2553_v16 = vor.u32 %v2795_v24, %v2550_v29 }
 0x14c   :  { %v940_v59 = vmul.f32 %v2816_v58, %v937_v33  ;;  %v862_v60 = vpop.f32.mrf.mxu0  ;;  %vm945_vm2 = vweird.f32 %v2816_v58  ;;  %v2588_v33 = vld [vmem:[%s4187_s4 + $0x210] sm:$0xf] }
 0x14d   :  { %v888_v61 = vpop.f32.mrf.mxu2  ;;  %v927_v62 = vpop.f32.mrf.mxu1  ;;  %vm946_vm4 = vmor %vm944_vm3, %vm945_vm2  ;;  %v2589_v42 = vor.u32 %v2809_v36, %v2588_v33  ;;  %v2542_v36 = vld [vmem:[%s4187_s4 + $0x1c8] sm:$0xf0]  ;;  %vm1811_vm2 = vcmask 1044484   ;;  %vm1804_vm3 = vcmask 1044483  }
 0x14e   :  { %v941_v1 = vsub.f32 1.0, %v940_v59  ;;  %1542 = vmatpush.bf16.msra.mxu0 %v2601_v49  ;;  %v2803_v59 = vld [vmem:[%s4187_s4 + $0x1f4] sm:$0xf0]  ;;  %v2801_v61 = vld [vmem:[%s4187_s4 + $0x1ec] sm:$0xf]  ;;  %v2545_v38 = vor.u32 %v2794_v31, %v2542_v36  ;;  %v2529_v49 = vor.u32 %v2789_v43, %v2526_v45 }
 0x14f   :  { %1464 = vmatpush.bf16.msra.mxu3 %v2589_v42  ;;  %v2565_v60 = vor.u32 %v2803_v59, %v2564_v35  ;;  %v2577_v0 = vor.u32 %v2801_v61, %v2574_v26  ;;  %v2791_v42 = vld [vmem:[%s4187_s4 + $0x194] sm:$0xf0]  ;;  %v2788_v59 = vld [vmem:[%s4187_s4 + $0x184] sm:$0xf]  ;;  %v2818_v61 = vpop.eup %2817  ;;  %v2798_v31 = vld [vmem:[%s4187_s4 + $0x1cc] sm:$0xf0] }
 0x150   :  { %v942_v13 = vmul.f32 %v2816_v58, %v941_v1  ;;  %v2382_v1 = vld [vmem:[%s4187_s4 + $0x80] sm:$0xf0]  ;;  %v2549_v36 = vor.u32 %v2798_v31, %v2548_v4  ;;  %v2606_v45 = vld [vmem:[%s4187_s4 + $0x238] sm:$0xf0]  ;;  %v2438_v31 = vld [vmem:[%s4187_s4 + $0xe8] sm:$0xf0] }
 0x152   :  { %v943_v25 = vadd.f32 %v2816_v58, %v942_v13  ;;  %v901_v28 = vpop.f32.mrf.mxu3  ;;  %1543 = vmatpush.bf16.msra.mxu0 %v2577_v0 }
 0x153   :  { %1465 = vmatpush.bf16.msra.mxu3 %v2565_v60  ;;  %v2541_v28 = vor.u32 %v2797_v14, %v2540_v55  ;;  %v2518_v60 = vld [vmem:[%s4187_s4 + $0x198] sm:$0xf0]  ;;  %v2452_v55 = vld [vmem:[%s4187_s4 + $0xf8] sm:$0xf]  ;;  %v929_v14 = vmul.f32 0.5, %v3657_v12 }
 0x154   :  { %v947_v32 = vsel %vm946_vm4, %v2816_v58, %v943_v25  ;;  %v2593_v58 = vor.u32 %v2806_v51, %v2590_v52  ;;  %v2521_v26 = vor.u32 %v2788_v59, %v2518_v60  ;;  %v2784_v12 = vld [vmem:[%s4187_s4 + $0x164] sm:$0xf]  ;;  %v2778_v59 = vld [vmem:[%s4187_s4 + $0x134] sm:$0xf]  ;;  %v2486_v60 = vld [vmem:[%s4187_s4 + $0x148] sm:$0xf0] }
 0x155   :  { %v3757_v39 = vsel %vm949_vm5, %v951_v41, %v947_v32  ;;  %v912_v10 = vpop.f32.mrf.mxu0  ;;  %v2747_v41 = vld [vmem:[%s4187_s4 + $0x3c] sm:$0xf]  ;;  %vm1813_vm4 = vcmask 1045508   ;;  %vm1815_vm5 = vcmask 1043457  }
 0x156   :  { %v969_v46 = vmul.f32 1.0614054, %v3757_v39  ;;  %v913_v47 = vadd.f32 %v912_v10, %v900_v34  ;;  %1490 = vmatpush.bf16.msra.mxu1 %v2593_v58  ;;  %v2361_v33 = vor.u32 %v2747_v41, %v2358_v30  ;;  %1544 = vmatpush.bf16.msra.mxu0 %v2553_v16  ;;  %v2516_v10 = vld [vmem:[%s4187_s4 + $0x180] sm:$0xf] }
 0x157   :  { %1466 = vmatpush.bf16.msra.mxu3 %v2541_v28 }
 0x158   :  { %v971_v53 = vadd.f32 -1.4531521, %v969_v46  ;;  %v3777_v57 = vadd.f32 %v3696_v40, %v913_v47  ;;  %v2753_v40 = vld [vmem:[%s4187_s4 + $0x6c] sm:$0xf]  ;;  %v2500_v46 = vld [vmem:[%s4187_s4 + $0x158] sm:$0xf]  ;;  %v2517_v47 = vor.u32 %v2791_v42, %v2516_v10 }
 0x159   :  { %v2385_v2 = vor.u32 %v2753_v40, %v2382_v1  ;;  %v2501_v52 = vor.u32 %v2786_v50, %v2500_v46  ;;  %v2596_v40 = vld [vmem:[%s4187_s4 + $0x218] sm:$0xf]  ;;  %v2768_v10 = vld [vmem:[%s4187_s4 + $0xdc] sm:$0xf0] }
 0x15a   :  { %v973_v62 = vmul.f32 %v971_v53, %v3757_v39  ;;  %v3796_v63 = vmul.f32 0.70710677, %v3777_v57  ;;  %1491 = vmatpush.bf16.msra.mxu1 %v2569_v23  ;;  %v2741_v53 = vld [vmem:[%s4187_s4 + $0xc] sm:$0xf]  ;;  %1545 = vmatpush.bf16.msra.mxu0 %v2529_v49  ;;  %v2524_v49 = vld [vmem:[%s4187_s4 + $0x188] sm:$0xf] }
 0x15b   :  { %1530 = vmatpush.bf16.msra.mxu2 %v2385_v2  ;;  %1467 = vmatpush.bf16.msra.mxu3 %v2517_v47  ;;  %v2337_v35 = vor.u32 %v2741_v53, %v2334_v54  ;;  %v2762_v53 = vld [vmem:[%s4187_s4 + $0xac] sm:$0xf0] }
 0x15c   :  { %v975_v15 = vadd.f32 1.4214138, %v973_v62  ;;  %v3808_v21 = vand.u32 2147483647, %v3796_v63  ;;  %v2476_v62 = vld [vmem:[%s4187_s4 + $0x128] sm:$0xf] }
 0x15d   :  { %v914_v13 = vpop.f32.mrf.mxu0  ;;  %vm1000_vm11 = vcmp.ge.f32.partialorder %v3796_v63, 0.0  ;;  %v2342_v63 = vld [vmem:[%s4187_s4 + $0x28] sm:$0xf0] }
 0x15e   :  { %v977_v25 = vmul.f32 %v975_v15, %v3757_v39  ;;  %v936_v27 = vmul.f32 0.3275911, %v3808_v21  ;;  %1492 = vmatpush.bf16.msra.mxu1 %v2545_v38  ;;  %v2477_v15 = vor.u32 %v2780_v5, %v2476_v62  ;;  %v2804_v13 = vld [vmem:[%s4187_s4 + $0x1fc] sm:$0xf0]  ;;  %v2428_v38 = vld [vmem:[%s4187_s4 + $0xc8] sm:$0xf] }
 0x15f   :  { %1531 = vmatpush.bf16.msra.mxu2 %v2361_v33  ;;  %1499 = vmatpush.bf16.msrb.mxu3 %v2501_v52  ;;  %v2510_v33 = vld [vmem:[%s4187_s4 + $0x178] sm:$0xf0]  ;;  %v2429_v46 = vor.u32 %v2768_v10, %v2428_v38  ;;  %v2404_v52 = vld [vmem:[%s4187_s4 + $0x98] sm:$0xf]  ;;  %v2582_v62 = vld [vmem:[%s4187_s4 + $0x208] sm:$0xf0] }
 0x160   :  { %v979_v32 = vadd.f32 -0.28449672, %v977_v25  ;;  %v3833_v34 = vadd.f32 1.0, %v936_v27  ;;  %v2573_v25 = vor.u32 %v2804_v13, %v2572_v18  ;;  %v2774_v27 = vld [vmem:[%s4187_s4 + $0x10c] sm:$0xf0]  ;;  %v2489_v18 = vor.u32 %v2778_v59, %v2486_v60 }
 0x161   :  { %v2453_v41 = vor.u32 %v2774_v27, %v2452_v55  ;;  %v2380_v5 = vld [vmem:[%s4187_s4 + $0x68] sm:$0xf]  ;;  %v2356_v27 = vld [vmem:[%s4187_s4 + $0x38] sm:$0xf]  ;;  %v2744_v10 = vld [vmem:[%s4187_s4 + $0x1c] sm:$0xf0] }
 0x162   :  { %v981_v44 = vmul.f32 %v979_v32, %v3757_v39  ;;  %2819 = vrcp.f32 %v3833_v34  ;;  %1493 = vmatpush.bf16.msra.mxu1 %v2521_v26  ;;  %v963_v29 = vand.u32 2147483647, %v3833_v34  ;;  %v965_v16 = vand.u32 2147483648, %v3833_v34  ;;  %v2332_v38 = vld [vmem:[%s4187_s4 + $0x8] sm:$0xf] }
 0x163   :  { %1532 = vmatpush.bf16.msra.mxu2 %v2337_v35  ;;  %1500 = vmatpush.bf16.msrb.mxu3 %v2477_v15  ;;  %vm959_vm8 = vweird.f32 %v3833_v34  ;;  %v2513_v35 = vor.u32 %v2784_v12, %v2510_v33  ;;  %v2534_v33 = vld [vmem:[%s4187_s4 + $0x1a8] sm:$0xf0] }
 0x164   :  { %v983_v51 = vadd.f32 0.2548296, %v981_v44  ;;  %v2808_v44 = vld [vmem:[%s4187_s4 + $0x224] sm:$0xf]  ;;  %vm964_vm10 = vcmp.eq.f32.partialorder %v963_v29, 8.507059e+37  ;;  %v966_v47 = vor.u32 1.1754944e-38, %v965_v16 }
 0x166   :  { %v985_v58 = vmul.f32 %v983_v51, %v3757_v39  ;;  %v2810_v39 = vld [vmem:[%s4187_s4 + $0x22c] sm:$0xf0]  ;;  %v2792_v51 = vld [vmem:[%s4187_s4 + $0x19c] sm:$0xf0] }
 0x167   :  { %v2597_v2 = vor.u32 %v2810_v39, %v2596_v40  ;;  %1501 = vmatpush.bf16.msrb.mxu3 %v2453_v41  ;;  %v2802_v39 = vld [vmem:[%s4187_s4 + $0x1f4] sm:$0xf] }
 0x168   :  { %v2820_v0 = vpop.eup %2819  ;;  %v995_v1 = vmul.f32 %v2818_v61, %v985_v58  ;;  %v988_v58 = vsub.f32 0.0, %v3808_v21  ;;  %v2609_v61 = vor.u32 %v2808_v44, %v2606_v45  ;;  %v2585_v13 = vor.u32 %v2802_v39, %v2582_v62 }
 0x169   :  { %v955_v9 = vmul.f32 %v2820_v0, %v3833_v34  ;;  %1516 = vmatpush.bf16.msrb.mxu1 %v2597_v2  ;;  %vm960_vm7 = vweird.f32 %v2820_v0 }
 0x16a   :  { %v997_v23 = vsub.f32 1.0, %v995_v1  ;;  %vm961_vm9 = vmor %vm959_vm8, %vm960_vm7  ;;  %v2405_v1 = vor.u32 %v2762_v53, %v2404_v52  ;;  %v990_v15 = vmul.f32 %v988_v58, %v3808_v21  ;;  %v2558_v21 = vld [vmem:[%s4187_s4 + $0x1d8] sm:$0xf0]  ;;  %v2754_v52 = vld [vmem:[%s4187_s4 + $0x74] sm:$0xf] }
 0x16b   :  { %v956_v24 = vsub.f32 1.0, %v955_v9  ;;  %1502 = vmatpush.bf16.msrb.mxu3 %v2429_v46  ;;  %v2756_v9 = vld [vmem:[%s4187_s4 + $0x7c] sm:$0xf0]  ;;  %v2760_v46 = vld [vmem:[%s4187_s4 + $0xa4] sm:$0xf] }
 0x16c   :  { %v1001_v28 = vsub.f32 0.0, %v997_v23  ;;  %v993_v16 = vmul.f32 1.442695, %v990_v15  ;;  %v2390_v53 = vld [vmem:[%s4187_s4 + $0x88] sm:$0xf0] }
 0x16d   :  { %v957_v30 = vmul.f32 %v2820_v0, %v956_v24  ;;  %1517 = vmatpush.bf16.msrb.mxu1 %v2573_v25  ;;  %v2796_v24 = vld [vmem:[%s4187_s4 + $0x1c4] sm:$0xf]  ;;  %v2381_v25 = vor.u32 %v2756_v9, %v2380_v5  ;;  %v2393_v59 = vor.u32 %v2754_v52, %v2390_v53  ;;  %v2742_v5 = vld [vmem:[%s4187_s4 + $0x14] sm:$0xf]  ;;  %v2604_v9 = vld [vmem:[%s4187_s4 + $0x220] sm:$0xf] }
 0x16e   :  { %v1003_v32 = vsel %vm999_vm6, %v997_v23, %v1001_v28  ;;  %v2772_v23 = vld [vmem:[%s4187_s4 + $0x104] sm:$0xf]  ;;  %v2750_v28 = vld [vmem:[%s4187_s4 + $0x4c] sm:$0xf0]  ;;  %v2561_v12 = vor.u32 %v2796_v24, %v2558_v21  ;;  %2821 = vpow2.f32 %v993_v16  ;;  %v2745_v52 = vld [vmem:[%s4187_s4 + $0x24] sm:$0xf0] }
 0x16f   :  { %v1005_v42 = vadd.f32 1.0, %v1003_v32  ;;  %v958_v43 = vadd.f32 %v2820_v0, %v957_v30  ;;  %1503 = vmatpush.bf16.msrb.mxu3 %v2405_v1  ;;  %v2766_v30 = vld [vmem:[%s4187_s4 + $0xd4] sm:$0xf]  ;;  %v2580_v21 = vld [vmem:[%s4187_s4 + $0x1f0] sm:$0xf]  ;;  %vm1806_vm6 = vcmask 1042432  }
 0x170   :  { %v2790_v32 = vld [vmem:[%s4187_s4 + $0x194] sm:$0xf] }
 0x171   :  { %v1007_v50 = vmul.f32 %v1005_v42, %v929_v14  ;;  %v962_v34 = vsel %vm961_vm9, %v2820_v0, %v958_v43  ;;  %1518 = vmatpush.bf16.msrb.mxu1 %v2549_v36  ;;  %v2525_v0 = vor.u32 %v2792_v51, %v2524_v49  ;;  %v2462_v14 = vld [vmem:[%s4187_s4 + $0x118] sm:$0xf0]  ;;  %v2357_v36 = vor.u32 %v2750_v28, %v2356_v27  ;;  %v2460_v28 = vld [vmem:[%s4187_s4 + $0x100] sm:$0xf] }
 0x172   :  { %v3938_v54 = vsel %vm964_vm10, %v966_v47, %v962_v34  ;;  %v2465_v41 = vor.u32 %v2772_v23, %v2462_v14  ;;  %v2441_v43 = vor.u32 %v2766_v30, %v2438_v31  ;;  %v2537_v44 = vor.u32 %v2790_v32, %v2534_v33  ;;  %v2414_v47 = vld [vmem:[%s4187_s4 + $0xb8] sm:$0xf0]  ;;  %v2799_v30 = vld [vmem:[%s4187_s4 + $0x1d4] sm:$0xf0]  ;;  %v2769_v31 = vld [vmem:[%s4187_s4 + $0xe4] sm:$0xf0] }
 0x173   :  { %v3947_v26 = vpack.c.bf16 %v1007_v50, %v1007_v50  ;;  %v970_v40 = vmul.f32 1.0614054, %v3938_v54  ;;  %1504 = vmatpush.bf16.msrb.mxu3 %v2381_v25  ;;  %v2333_v49 = vor.u32 %v2744_v10, %v2332_v38  ;;  %v2417_v34 = vor.u32 %v2760_v46, %v2414_v47  ;;  %v2805_v25 = vld [vmem:[%s4187_s4 + $0x204] sm:$0xf0]  ;;  %v2532_v33 = vld [vmem:[%s4187_s4 + $0x190] sm:$0xf] }
 0x174   :  { %v2822_v58 = vpop.eup %2821  ;;  %v2345_v14 = vor.u32 %v2742_v5, %v2342_v63  ;;  %v2581_v16 = vor.u32 %v2805_v25, %v2580_v21  ;;  %v2412_v38 = vld [vmem:[%s4187_s4 + $0xa0] sm:$0xf]  ;;  %v2763_v10 = vld [vmem:[%s4187_s4 + $0xb4] sm:$0xf0] }
 0x175   :  { %v972_v2 = vadd.f32 -1.4531521, %v970_v40  ;;  %1455 = vmatmul.bf16.vlgmr.msrb.gmra.mxu2 %v3947_v26  ;;  %1481 = vmatmul.bf16.vlgmr.msrb.gmra.mxu0 %v3947_v26  ;;  %v2636_v46 = vld [vmem:[%s4183_s0] sm:$0xff] }
 0x176   :  { %1577 = vmatpush.bf16.msrb.mxu0 %v2513_v35  ;;  %1594 = vmatpush.bf16.msrb.mxu2 %v2609_v61  ;;  %v2366_v61 = vld [vmem:[%s4187_s4 + $0x58] sm:$0xf0] }
 0x177   :  { %v974_v55 = vmul.f32 %v972_v2, %v3938_v54  ;;  %1519 = vmatpush.bf16.msrb.mxu1 %v2525_v0  ;;  %1505 = vmatpush.bf16.msrb.mxu3 %v2357_v36  ;;  %v2508_v0 = vld [vmem:[%s4187_s4 + $0x160] sm:$0xf]  ;;  %v2787_v2 = vld [vmem:[%s4187_s4 + $0x174] sm:$0xf0] }
 0x179   :  { %v976_v29 = vadd.f32 1.4214138, %v974_v55  ;;  %v2781_v55 = vld [vmem:[%s4187_s4 + $0x144] sm:$0xf0] }
 0x17a   :  { %1578 = vmatpush.bf16.msrb.mxu0 %v2489_v18  ;;  %1595 = vmatpush.bf16.msrb.mxu2 %v2585_v13  ;;  %v2509_v18 = vor.u32 %v2787_v2, %v2508_v0  ;;  %v2484_v13 = vld [vmem:[%s4187_s4 + $0x130] sm:$0xf] }
 0x17b   :  { %v978_v4 = vmul.f32 %v976_v29, %v3938_v54  ;;  %1506 = vmatpush.bf16.msrb.mxu3 %v2333_v49  ;;  %v2485_v27 = vor.u32 %v2781_v55, %v2484_v13  ;;  %v2775_v29 = vld [vmem:[%s4187_s4 + $0x114] sm:$0xf0]  ;;  %v2364_v49 = vld [vmem:[%s4187_s4 + $0x40] sm:$0xf] }
 0x17d   :  { %v980_v42 = vadd.f32 -0.28449672, %v978_v4  ;;  %v2436_v4 = vld [vmem:[%s4187_s4 + $0xd0] sm:$0xf] }
 0x17e   :  { %1579 = vmatpush.bf16.msrb.mxu0 %v2465_v41  ;;  %1596 = vmatpush.bf16.msrb.mxu2 %v2561_v12  ;;  %v2556_v41 = vld [vmem:[%s4187_s4 + $0x1c0] sm:$0xf]  ;;  %v2461_v12 = vor.u32 %v2775_v29, %v2460_v28  ;;  %v2437_v36 = vor.u32 %v2769_v31, %v2436_v4 }
 0x17f   :  { %v982_v45 = vmul.f32 %v980_v42, %v3938_v54  ;;  %v2557_v32 = vor.u32 %v2799_v30, %v2556_v41 }
 0x181   :  { %v984_v50 = vadd.f32 0.2548296, %v982_v45  ;;  %v2757_v45 = vld [vmem:[%s4187_s4 + $0x84] sm:$0xf0] }
 0x182   :  { %1580 = vmatpush.bf16.msrb.mxu0 %v2441_v43  ;;  %1597 = vmatpush.bf16.msrb.mxu2 %v2537_v44  ;;  %v2413_v43 = vor.u32 %v2763_v10, %v2412_v38  ;;  %v2388_v44 = vld [vmem:[%s4187_s4 + $0x70] sm:$0xf] }
 0x183   :  { %v986_v51 = vmul.f32 %v984_v50, %v3938_v54  ;;  %v2748_v54 = vld [vmem:[%s4187_s4 + $0x44] sm:$0xf]  ;;  %v2389_v47 = vor.u32 %v2757_v45, %v2388_v44  ;;  %v2751_v50 = vld [vmem:[%s4187_s4 + $0x54] sm:$0xf0] }
 0x184   :  { %v2369_v39 = vor.u32 %v2748_v54, %v2366_v61 }
 0x185   :  { %v996_v35 = vmul.f32 %v2822_v58, %v986_v51  ;;  %1533 = vmatmul.bf16.vlgmr.msra.gmra.mxu2 %v3947_v26  ;;  %v2340_v51 = vld [vmem:[%s4187_s4 + $0x10] sm:$0xf] }
 0x186   :  { %1581 = vmatpush.bf16.msrb.mxu0 %v2417_v34  ;;  %1694 = vmatpush.bf16.msra.mxu2 %v2951_v19  ;;  %v930_v19 = vmul.f32 0.5, %v3777_v57  ;;  %v2811_v57 = vld [vmem:[%s4187_s4 + $0x234] sm:$0xf0]  ;;  %v2365_v34 = vor.u32 %v2751_v50, %v2364_v49  ;;  %v2341_v53 = vor.u32 %v2745_v52, %v2340_v51 }
 0x187   :  { %v998_v60 = vsub.f32 1.0, %v996_v35  ;;  %v2605_v24 = vor.u32 %v2811_v57, %v2604_v9 }
 0x189   :  { %v1002_v40 = vsub.f32 0.0, %v998_v60 }
 0x18a   :  { %1582 = vmatpush.bf16.msrb.mxu0 %v2393_v59 }
 0x18b   :  { %v1004_v62 = vsel %vm1000_vm11, %v998_v60, %v1002_v40 }
 0x18c   :  { %v1006_v1 = vadd.f32 1.0, %v1004_v62 }
 0x18e   :  { %v1008_v15 = vmul.f32 %v1006_v1, %v930_v19  ;;  %1583 = vmatpush.bf16.msrb.mxu0 %v2369_v39 }
 0x190   :  { %v1010_v23 = vpack.c.bf16 %v1008_v15, %v1008_v15 }
 0x192   :  { %2610 = vmatmul.msk.bf16.vlgmr.msra.gmra.mxu3 %vm1443_vm12, %v1010_v23  ;;  %2611 = vmatmul.msk.bf16.vlgmr.msra.gmra.mxu1 %vm1443_vm12, %v1010_v23 }
 0x193   :  { %2613 = vmatmul.msk.bf16.vlgmr.msra.gmra.mxu0 %vm1443_vm12, %v1010_v23  ;;  %1551 = vmatpush.bf16.msra.mxu1 %v2509_v18 }
 0x194   :  { %1584 = vmatpush.bf16.msrb.mxu0 %v2345_v14  ;;  %1568 = vmatpush.bf16.msra.mxu3 %v2605_v24 }
 0x195   :  { %2615 = vmatmul.msk.bf16.vlgmr.msrb.gmra.mxu2 %vm1443_vm12, %v1010_v23 }
 0x197   :  { %1552 = vmatpush.bf16.msra.mxu1 %v2485_v27 }
 0x198   :  { %1713 = vmatpush.bf16.msra.mxu0 %v2928_v8  ;;  %1569 = vmatpush.bf16.msra.mxu3 %v2581_v16  ;;  %v2793_v8 = vld [vmem:[%s4187_s4 + $0x1a4] sm:$0xf0] }
 0x199   :  { %v2533_v42 = vor.u32 %v2793_v8, %v2532_v33 }
 0x19b   :  { %1553 = vmatpush.bf16.msra.mxu1 %v2461_v12 }
 0x19c   :  { %1570 = vmatpush.bf16.msra.mxu3 %v2557_v32 }
 0x19f   :  { %1554 = vmatpush.bf16.msra.mxu1 %v2437_v36 }
 0x1a0   :  { %1571 = vmatpush.bf16.msra.mxu3 %v2533_v42 }
 0x1a2   :  { %1507 = vmatmul.bf16.vlgmr.msrb.gmra.mxu3 %v3947_v26  ;;  %2612 = vmatmul.msk.bf16.vlgmr.msrb.gmra.mxu1 %vm1443_vm12, %v1010_v23 }
 0x1a3   :  { %1585 = vmatmul.bf16.vlgmr.msrb.gmra.mxu0 %v3947_v26  ;;  %1555 = vmatpush.bf16.msra.mxu1 %v2413_v43 }
 0x1a4   :  { %1656 = vmatpush.bf16.msrb.mxu3 %v2915_v3  ;;  %v2637_v3 = vld [vmem:[%s4183_s0 + $0x8] sm:$0xff]  ;;  %s2873_s0 = smov [#allocation2]  }
 0x1a5   :  { %2628 = vmatmul.msk.bf16.vlgmr.msra.gmra.mxu2 %vm30_vm0, %v2636_v46  ;;  %s1894_s4 = sshll.u32 %s2873_s0, 4  ;;  %s1895_s4 = int_to_ptr.vmem [resolvable:$true] %s1894_s4 }
 0x1a7   :  { %1556 = vmatpush.bf16.msra.mxu1 %v2389_v47 }
 0x1ab   :  { %1557 = vmatpush.bf16.msra.mxu1 %v2365_v34 }
 0x1af   :  { %1558 = vmatpush.bf16.msra.mxu1 %v2341_v53 }
 0x1b2   :  { %1559 = vmatmul.bf16.vlgmr.msra.gmra.mxu1 %v3947_v26  ;;  %2614 = vmatmul.msk.bf16.vlgmr.msra.gmra.mxu3 %vm1443_vm12, %v1010_v23 }
 0x1b3   :  { %1675 = vmatpush.bf16.msrb.mxu1 %v2926_v7  ;;  %2630 = vmatmul.msk.bf16.vlgmr.msra.gmra.mxu0 %vm30_vm0, %v2636_v46 }
 0x1b4   :  { %1732 = vmatpush.bf16.msra.mxu3 %v2953_v20 }
 0x1b5   :  { %2629 = vmatmul.msk.bf16.gmra.mxu2 %vm30_vm0, %v2637_v3 }
 0x1b7   :  { %1751 = vmatpush.bf16.msra.mxu1 %v2967_v37 }
 0x1c2   :  { %2624 = vmatmul.msk.bf16.vlgmr.msrb.gmra.mxu3 %vm30_vm0, %v2636_v46  ;;  %2626 = vmatmul.msk.bf16.vlgmr.msrb.gmra.mxu1 %vm30_vm0, %v2636_v46 }
 0x1c3   :  { %2631 = vmatmul.msk.bf16.gmra.mxu0 %vm30_vm0, %v2637_v3 }
 0x1d2   :  { %2625 = vmatmul.msk.bf16.gmra.mxu3 %vm30_vm0, %v2637_v3  ;;  %2627 = vmatmul.msk.bf16.gmra.mxu1 %vm30_vm0, %v2637_v3 }
 0x1e2   :  { %2632 = vmatmul.msk.bf16.vlgmr.msra.gmra.mxu3 %vm30_vm0, %v2636_v46  ;;  %2634 = vmatmul.msk.bf16.vlgmr.msra.gmra.mxu1 %vm30_vm0, %v2636_v46 }
 0x1f2   :  { %2633 = vmatmul.msk.bf16.gmra.mxu3 %vm30_vm0, %v2637_v3  ;;  %2635 = vmatmul.msk.bf16.gmra.mxu1 %vm30_vm0, %v2637_v3  ;;  %v1482_v7 = vpop.f32.mrf.mxu0  ;;  %vm1802_vm0 = vcmask 1043459  }
 0x1f8   :  { %v1456_v20 = vpop.f32.mrf.mxu2 }
 0x1fa   :  { %v1484_v37 = vpop.f32.mrf.mxu0 }
 0x200   :  { %v1458_v26 = vpop.f32.mrf.mxu2 }
 0x208   :  { %v1534_v58 = vpop.f32.mrf.mxu2 }
 0x20f   :  { %v1495_v35 = vpop.f32.mrf.mxu1 }
 0x210   :  { %v1547_v59 = vpop.f32.mrf.mxu0  ;;  %v1536_v60 = vpop.f32.mrf.mxu2  ;;  %v1496_v5 = vadd.f32 %v1495_v35, %v1482_v7 }
 0x211   :  { %v1548_v63 = vadd.f32 %v1547_v59, %v1534_v58 }
 0x212   :  { %v1604_v23 = vsub.f32 0.0, %v1496_v5 }
 0x213   :  { %v1606_v13 = vsub.f32 0.0, %v1548_v63 }
 0x214   :  { %v1611_v25 = vmul.f32 1.442695, %v1604_v23 }
 0x215   :  { %v1469_v54 = vpop.f32.mrf.mxu3  ;;  %v1615_v27 = vmul.f32 1.442695, %v1606_v13 }
 0x216   :  { %v1470_v57 = vadd.f32 %v1469_v54, %v1456_v20  ;;  %2823 = vpow2.f32 %v1611_v25 }
 0x217   :  { %v1497_v61 = vpop.f32.mrf.mxu1  ;;  %2825 = vpow2.f32 %v1615_v27 }
 0x218   :  { %v1549_v40 = vpop.f32.mrf.mxu0  ;;  %v1599_v39 = vpop.f32.mrf.mxu2  ;;  %v1603_v14 = vsub.f32 0.0, %v1470_v57 }
 0x21a   :  { %v1609_v16 = vmul.f32 1.442695, %v1603_v14 }
 0x21c   :  { %2827 = vpow2.f32 %v1609_v16  ;;  %v2824_v33 = vpop.eup %2823 }
 0x21d   :  { %v1471_v62 = vpop.f32.mrf.mxu3  ;;  %v2826_v38 = vpop.eup %2825  ;;  %v1622_v44 = vadd.f32 1.0, %v2824_v33 }
 0x21e   :  { %v1624_v45 = vadd.f32 1.0, %v2826_v38 }
 0x21f   :  { %v1521_v0 = vpop.f32.mrf.mxu1 }
 0x220   :  { %v1586_v19 = vpop.f32.mrf.mxu0  ;;  %v1601_v1 = vpop.f32.mrf.mxu2 }
 0x221   :  { %v1600_v55 = vadd.f32 %v1599_v39, %v1586_v19 }
 0x222   :  { %v2828_v10 = vpop.eup %2827 }
 0x223   :  { %v1608_v28 = vsub.f32 0.0, %v1600_v55  ;;  %v1621_v47 = vadd.f32 1.0, %v2828_v10 }
 0x225   :  { %v1508_v2 = vpop.f32.mrf.mxu3  ;;  %v1619_v30 = vmul.f32 1.442695, %v1608_v28 }
 0x226   :  { %v1522_v18 = vadd.f32 %v1521_v0, %v1508_v2 }
 0x227   :  { %v1523_v9 = vpop.f32.mrf.mxu1 }
 0x228   :  { %v1588_v15 = vpop.f32.mrf.mxu0  ;;  %v1605_v24 = vsub.f32 0.0, %v1522_v18  ;;  %v1696_v32 = vpop.f32.mrf.mxu2 }
 0x229   :  { %v1765_v63 = vadd.f32 %v1696_v32, %v3485_v11 }
 0x22a   :  { %v1613_v41 = vmul.f32 1.442695, %v1605_v24 }
 0x22c   :  { %2829 = vpow2.f32 %v1613_v41 }
 0x22d   :  { %v1510_v21 = vpop.f32.mrf.mxu3  ;;  %2831 = vpow2.f32 %v1619_v30 }
 0x22f   :  { %v1560_v29 = vpop.f32.mrf.mxu1 }
 0x230   :  { %v1715_v36 = vpop.f32.mrf.mxu0  ;;  %v1698_v52 = vpop.f32.mrf.mxu2 }
 0x231   :  { %v1766_v18 = vadd.f32 %v1715_v36, %v3398_v22  ;;  %v1771_v23 = vadd.f32 %v1698_v52, %v3485_v11 }
 0x232   :  { %v2830_v43 = vpop.eup %2829 }
 0x233   :  { %v2832_v46 = vpop.eup %2831  ;;  %v1623_v50 = vadd.f32 1.0, %v2830_v43 }
 0x234   :  { %v1626_v51 = vadd.f32 1.0, %v2832_v46 }
 0x235   :  { %v1573_v12 = vpop.f32.mrf.mxu3 }
 0x236   :  { %v1574_v4 = vadd.f32 %v1573_v12, %v1560_v29 }
 0x237   :  { %v1562_v31 = vpop.f32.mrf.mxu1 }
 0x238   :  { %v1607_v8 = vsub.f32 0.0, %v1574_v4  ;;  %v1717_v3 = vpop.f32.mrf.mxu0  ;;  %v1701_v0 = vpop.f32.mrf.mxu2 }
 0x239   :  { %v1772_v29 = vadd.f32 %v1717_v3, %v3398_v22  ;;  %v1777_v38 = vadd.f32 %v1701_v0, %v3485_v11 }
 0x23a   :  { %v1617_v42 = vmul.f32 1.442695, %v1607_v8 }
 0x23c   :  { %2833 = vpow2.f32 %v1617_v42 }
 0x23d   :  { %v1575_v49 = vpop.f32.mrf.mxu3  ;;  %2835 = vrcp.f32 %v1622_v44 }
 0x23e   :  { %2837 = vrcp.f32 %v1624_v45 }
 0x23f   :  { %v1677_v34 = vpop.f32.mrf.mxu1  ;;  %2839 = vrcp.f32 %v1621_v47 }
 0x240   :  { %2841 = vrcp.f32 %v1623_v50  ;;  %v1720_v2 = vpop.f32.mrf.mxu0  ;;  %v1764_v28 = vadd.f32 %v1677_v34, %v3389_v17  ;;  %v1703_v46 = vpop.f32.mrf.mxu2 }
 0x241   :  { %2843 = vrcp.f32 %v1626_v51  ;;  %v1778_v44 = vadd.f32 %v1720_v2, %v3398_v22 }
 0x242   :  { %v2834_v53 = vpop.eup %2833 }
 0x243   :  { %v1625_v7 = vadd.f32 1.0, %v2834_v53  ;;  %v2836_v20 = vpop.eup %2835 }
 0x244   :  { %v2838_v26 = vpop.eup %2837  ;;  %v1793_v60 = vrot.slane %v2836_v20, 7  ;;  %v1783_v20 = vadd.f32 %v1703_v46, %v3485_v11 }
 0x245   :  { %2845 = vrcp.f32 %v1625_v7  ;;  %v1658_v37 = vpop.f32.mrf.mxu3  ;;  %v2840_v58 = vpop.eup %2839  ;;  %v1795_v61 = vrot.slane %v2838_v26, 5 }
 0x246   :  { %v2842_v59 = vpop.eup %2841  ;;  %v1799_v62 = vsel %vm1798_vm13, %v2840_v58, %v1793_v60  ;;  %v1808_v19 = vsel %vm77_vm1, %v2840_v58, %v1793_v60  ;;  %v1763_v36 = vadd.f32 %v1658_v37, %v3375_v6 }
 0x247   :  { %v1679_v35 = vpop.f32.mrf.mxu1  ;;  %v2844_v54 = vpop.eup %2843  ;;  %v1794_v39 = vrot.slane %v2842_v59, 6 }
 0x248   :  { %v1797_v5 = vrot.slane %v2844_v54, 3  ;;  %v1770_v43 = vadd.f32 %v1679_v35, %v3389_v17  ;;  %v1722_v50 = vpop.f32.mrf.mxu0 }
 0x249   :  { %v1801_v13 = vsel %vm1800_vm14, %v1799_v62, %v1794_v39  ;;  %v1810_v55 = vsel %vm1809_vm15, %v1808_v19, %v1794_v39  ;;  %v1784_v26 = vadd.f32 %v1722_v50, %v3398_v22 }
 0x24b   :  { %v2846_v40 = vpop.eup %2845 }
 0x24c   :  { %v1796_v1 = vrot.slane %v2846_v40, 4 }
 0x24d   :  { %v1660_v9 = vpop.f32.mrf.mxu3 }
 0x24e   :  { %v1803_v57 = vsel %vm1802_vm0, %v1795_v61, %v1796_v1  ;;  %v1812_v15 = vsel %vm1811_vm2, %v1795_v61, %v1796_v1  ;;  %v1769_v7 = vadd.f32 %v1660_v9, %v3375_v6 }
 0x24f   :  { %v1805_v14 = vsel %vm1804_vm3, %v1803_v57, %v1797_v5  ;;  %v1814_v24 = vsel %vm1813_vm4, %v1812_v15, %v1797_v5  ;;  %v1682_v21 = vpop.f32.mrf.mxu1 }
 0x250   :  { %v1816_v25 = vsel %vm1815_vm5, %v1810_v55, %v1814_v24  ;;  %v4143_v27 = vsel %vm1806_vm6, %v1801_v13, %v1805_v14  ;;  %v1776_v51 = vadd.f32 %v1682_v21, %v3389_v17 }
 0x251   :  { %v4147_v16 = vrot.slane %v1816_v25, 1  ;;  %v1820_v41 = vperm.slane %v4143_v27, 2  ;;  %v1821_v30 = vperm.slane %v4143_v27, 3  ;;  %v1819_v12 = vperm.slane %v4143_v27, 1 }
 0x252   :  { %v1818_v4 = vperm.slane %v4143_v27, 0 }
 0x253   :  { %v1844_v31 = vmul.f32 %v1820_v41, %v1765_v63  ;;  %v1845_v32 = vmul.f32 %v1821_v30, %v1766_v18  ;;  %v1843_v33 = vmul.f32 %v1819_v12, %v1764_v28  ;;  %v1850_v8 = vmul.f32 %v1820_v41, %v1771_v23 }
 0x254   :  { %v1826_v10 = vperm.slane %v4147_v16, 2  ;;  %v1851_v42 = vmul.f32 %v1821_v30, %v1772_v29  ;;  %v1827_v45 = vperm.slane %v4147_v16, 3  ;;  %v1842_v49 = vmul.f32 %v1818_v4, %v1763_v36 }
 0x255   :  { %1868 = vst [vmem:[#allocation2 + $0x10] sm:$0xff] %v1844_v31  ;;  %v1663_v47 = vpop.f32.mrf.mxu3  ;;  %v1849_v34 = vmul.f32 %v1819_v12, %v1770_v43  ;;  %v1825_v52 = vperm.slane %v4147_v16, 1  ;;  %v1848_v58 = vmul.f32 %v1818_v4, %v1769_v7  ;;  %v1824_v61 = vperm.slane %v4147_v16, 0 }
 0x256   :  { %1869 = vst [vmem:[#allocation2 + $0x18] sm:$0xff] %v1845_v32  ;;  %v1856_v3 = vmul.f32 %v1826_v10, %v1777_v38  ;;  %v1857_v37 = vmul.f32 %v1827_v45, %v1778_v44  ;;  %v1775_v35 = vadd.f32 %v1663_v47, %v3375_v6  ;;  %v1862_v54 = vmul.f32 %v1826_v10, %v1783_v20 }
 0x257   :  { %1867 = vst [vmem:[#allocation2 + $0x8] sm:$0xff] %v1843_v33  ;;  %v1684_v53 = vpop.f32.mrf.mxu1  ;;  %v1855_v59 = vmul.f32 %v1825_v52, %v1776_v51  ;;  %v1863_v40 = vmul.f32 %v1827_v45, %v1784_v26  ;;  %v1829_v21 = vperm.slane %v4147_v16, 5  ;;  %v1828_v29 = vperm.slane %v4147_v16, 4 }
 0x258   :  { %1874 = vst [vmem:[#allocation2 + $0x40] sm:$0xff] %v1850_v8  ;;  %v1782_v60 = vadd.f32 %v1684_v53, %v3389_v17  ;;  %v1854_v11 = vmul.f32 %v1824_v61, %v1775_v35  ;;  %v1823_v17 = vperm.slane %v4143_v27, 5 }
 0x259   :  { %1875 = vst [vmem:[#allocation2 + $0x48] sm:$0xff] %v1851_v42 }
 0x25a   :  { %1866 = vst [vmem:[#allocation2] sm:$0xff] %v1842_v49  ;;  %v1861_v22 = vmul.f32 %v1825_v52, %v1782_v60 }
 0x25b   :  { %1873 = vst [vmem:[#allocation2 + $0x38] sm:$0xff] %v1849_v34 }
 0x25c   :  { %1880 = vst [vmem:[#allocation2 + $0x70] sm:$0xff] %v1856_v3 }
 0x25d   :  { %1881 = vst [vmem:[#allocation2 + $0x78] sm:$0xff] %v1857_v37  ;;  %v1665_v39 = vpop.f32.mrf.mxu3 }
 0x25e   :  { %1872 = vst [vmem:[#allocation2 + $0x30] sm:$0xff] %v1848_v58  ;;  %v1781_v62 = vadd.f32 %v1665_v39, %v3375_v6  ;;  %v1822_v6 = vperm.slane %v4143_v27, 4 }
 0x25f   :  { %1879 = vst [vmem:[#allocation2 + $0x68] sm:$0xff] %v1855_v59  ;;  %v1753_v0 = vpop.f32.mrf.mxu1 }
 0x260   :  { %1886 = vst [vmem:[#allocation2 + $0xa0] sm:$0xff] %v1862_v54  ;;  %v1860_v19 = vmul.f32 %v1824_v61, %v1781_v62  ;;  %v1768_v1 = vadd.f32 %v1753_v0, %v3461_v56 }
 0x261   :  { %1887 = vst [vmem:[#allocation2 + $0xa8] sm:$0xff] %v1863_v40 }
 0x262   :  { %1878 = vst [vmem:[#allocation2 + $0x60] sm:$0xff] %v1854_v11  ;;  %v1847_v2 = vmul.f32 %v1823_v17, %v1768_v1 }
 0x263   :  { %1885 = vst [vmem:[#allocation2 + $0x98] sm:$0xff] %v1861_v22 }
 0x264   :  { %1884 = vst [vmem:[#allocation2 + $0x90] sm:$0xff] %v1860_v19 }
 0x265   :  { %1871 = vst [vmem:[#allocation2 + $0x28] sm:$0xff] %v1847_v2  ;;  %v1734_v5 = vpop.f32.mrf.mxu3 }
 0x266   :  { %v1767_v63 = vadd.f32 %v1734_v5, %v3446_v48 }
 0x267   :  { %v1755_v9 = vpop.f32.mrf.mxu1 }
 0x268   :  { %v1846_v57 = vmul.f32 %v1822_v6, %v1767_v63  ;;  %v1774_v15 = vadd.f32 %v1755_v9, %v3461_v56 }
 0x26a   :  { %1870 = vst [vmem:[#allocation2 + $0x20] sm:$0xff] %v1846_v57  ;;  %v1853_v18 = vmul.f32 %v1823_v17, %v1774_v15 }
 0x26c   :  { %1877 = vst [vmem:[#allocation2 + $0x58] sm:$0xff] %v1853_v18 }
 0x26d   :  { %v1736_v23 = vpop.f32.mrf.mxu3 }
 0x26e   :  { %v1773_v13 = vadd.f32 %v1736_v23, %v3446_v48 }
 0x26f   :  { %v1758_v55 = vpop.f32.mrf.mxu1 }
 0x270   :  { %v1852_v14 = vmul.f32 %v1822_v6, %v1773_v13  ;;  %v1780_v24 = vadd.f32 %v1758_v55, %v3461_v56 }
 0x272   :  { %1876 = vst [vmem:[#allocation2 + $0x50] sm:$0xff] %v1852_v14  ;;  %v1859_v25 = vmul.f32 %v1829_v21, %v1780_v24 }
 0x274   :  { %1883 = vst [vmem:[#allocation2 + $0x88] sm:$0xff] %v1859_v25 }
 0x275   :  { %v1739_v27 = vpop.f32.mrf.mxu3 }
 0x276   :  { %v1779_v28 = vadd.f32 %v1739_v27, %v3446_v48 }
 0x277   :  { %v1760_v41 = vpop.f32.mrf.mxu1 }
 0x278   :  { %v1858_v30 = vmul.f32 %v1828_v29, %v1779_v28  ;;  %v1786_v12 = vadd.f32 %v1760_v41, %v3461_v56 }
 0x27a   :  { %1882 = vst [vmem:[#allocation2 + $0x80] sm:$0xff] %v1858_v30  ;;  %v1865_v4 = vmul.f32 %v1829_v21, %v1786_v12 }
 0x27c   :  { %1889 = vst [vmem:[#allocation2 + $0xb8] sm:$0xff] %v1865_v4 }
 0x27d   :  { %v1741_v31 = vpop.f32.mrf.mxu3 }
 0x27e   :  { %v1785_v32 = vadd.f32 %v1741_v31, %v3446_v48 }
 0x280   :  { %v1864_v33 = vmul.f32 %v1828_v29, %v1785_v32 }
 0x282   :  { %1888 = vst [vmem:[#allocation2 + $0xb0] sm:$0xff] %v1864_v33 }
 0x283   :  { %1902 = dma.vmem_to_hbm [thread:$0]  %s1895_s4, 3072, %s1897_s24, [#allocation3], %s2874_s25, %s2874_s25, %s2875_s26  }
 0x284   :  { %2871 = dma.done.wait [#allocation3], 3072  }
 0x285   :  { %2872 = vsyncadd [#allocation3], 4294964224 }
 0x286   :  { %1907 = vsyncpa [#allocation3], 1 }

</bundles_post_ra>
